<compile_context>
chip_gen: v5e
topology: v5e:2x2
jax: 0.10.0
libtpu: 0.0.40
codegen_flags: <defaults>
</compile_context>

<pallas_src>
import math
import jax
import jax.numpy as jnp
from jax import lax
from jax.experimental import pallas as pl
from jax.experimental.pallas import tpu as pltpu


# ----------------------------------------------------------------------------
# The single fused kernel.
#   x_ref    : (Bp, ninp)                      f32, batch padded to 8 rows
#   wx_ref   : (ninp, 2*L*H + S*4H)            bf16  [h0/c0 init | pos-folded layer-0 ih]
#   bx_ref   : (1,    2*L*H + S*4H)            f32
#   wall_ref : (H, L*4H + (L-1)*4H + OUTP)     bf16  [whh_0.. | wih_1.. | out_W(padded)]
#   ball_ref : (1,       (L-1)*4H + OUTP)      f32   [bl_1..  | out_b(padded)]
#   o_ref    : (Bp, S*OUTP)                    f32, batch-first flattened output
#   seq_ref  : VMEM scratch (S*Bp, H)  f32 — current layer's full output sequence
#   gih_ref  : VMEM scratch (S*Bp, 4H) f32 — hoisted input-to-hidden gates for the layer
# Gate order inside every 4H block is [i | f | o | g] (permuted at prep time).
# ----------------------------------------------------------------------------
def _emb2seq_fused_kernel(x_ref, wx_ref, bx_ref, wall_ref, ball_ref,
                          o_ref, seq_ref, gih_ref):
    Bp = x_ref.shape[0]
    H = wall_ref.shape[0]
    H4 = 4 * H
    L = (wall_ref.shape[1] - ball_ref.shape[1]) // H4
    OUTP = ball_ref.shape[1] - (L - 1) * H4
    S = seq_ref.shape[0] // Bp

    # ---- one startup matmul: [hc0 | gih0 for every timestep] ------------------
    xb = x_ref[...].astype(jnp.bfloat16)
    big = jnp.dot(xb, wx_ref[...], preferred_element_type=jnp.float32) + bx_ref[...]
    hc0 = big[:, :2 * L * H]                         # (Bp, 2*L*H), fits in ~1 vreg
    off0 = 2 * L * H
    for t in range(S):                               # spill gih0 to VMEM, load per step
        gih_ref[t * Bp:(t + 1) * Bp, :] = big[:, off0 + t * H4: off0 + (t + 1) * H4]

    def run_layer(layer):
        h = hc0[:, layer * H:(layer + 1) * H]                      # f32 state
        c = hc0[:, (L + layer) * H:(L + layer + 1) * H]
        whh_b = wall_ref[:, layer * H4:(layer + 1) * H4]           # bf16, VMEM resident
        for t in range(S):                                         # serial recurrence
            gates = gih_ref[t * Bp:(t + 1) * Bp, :] + jnp.dot(
                h.astype(jnp.bfloat16), whh_b,
                preferred_element_type=jnp.float32)
            # [i|f|o] in one EUP trip, g in one, tanh(c) in one  (3 trips/step)
            sig = 0.5 * jnp.tanh(0.5 * gates[:, :3 * H]) + 0.5
            i_g = sig[:, 0 * H:1 * H]
            f_g = sig[:, 1 * H:2 * H]
            o_g = sig[:, 2 * H:3 * H]
            g_g = jnp.tanh(gates[:, 3 * H:4 * H])
            c = f_g * c + i_g * g_g
            h = o_g * jnp.tanh(c)
            seq_ref[t * Bp:(t + 1) * Bp, :] = h                    # whole-tile store

    run_layer(0)

    # Layers >= 1: hoist the input-to-hidden projection over the whole sequence.
    for layer in range(1, L):
        wih_b = wall_ref[:, (L + layer - 1) * H4:(L + layer) * H4]     # bf16
        bl = ball_ref[:, (layer - 1) * H4:layer * H4]
        gih_ref[...] = (jnp.dot(seq_ref[...].astype(jnp.bfloat16), wih_b,
                                preferred_element_type=jnp.float32) + bl)
        run_layer(layer)

    # ---- shared output linear on the final sequence slab, stored batch-first --
    outw_b = wall_ref[:, (2 * L - 1) * H4:(2 * L - 1) * H4 + OUTP]
    outb = ball_ref[:, (L - 1) * H4:(L - 1) * H4 + OUTP]
    out = (jnp.dot(seq_ref[...].astype(jnp.bfloat16), outw_b,
                   preferred_element_type=jnp.float32) + outb)     # (S*Bp, OUTP)
    for t in range(S):                                             # 32-lane-aligned stores
        o_ref[:, t * OUTP:(t + 1) * OUTP] = out[t * Bp:(t + 1) * Bp, :]


# ----------------------------------------------------------------------------
# One-time weight re-layout (like loading a checkpoint).
# ----------------------------------------------------------------------------
_GATE_PERM = (0, 1, 3, 2)   # PyTorch LSTM [i,f,g,o]  ->  kernel [i,f,o,g]


def _reorder_gates(w):
    H = w.shape[-1] // 4
    return jnp.concatenate([w[..., g * H:(g + 1) * H] for g in _GATE_PERM], axis=-1)


def prepare_fused_params(params, *, out_lane_pad=32):
    pos_W, pos_b = params["pos_W"], params["pos_b"]          # (S, D, H), (S, 1, H)
    h0_W, h0_b = params["h0_W"], params["h0_b"]              # (L, D, H), (L, 1, H)
    c0_W, c0_b = params["c0_W"], params["c0_b"]
    Wih = _reorder_gates(params["lstm_Wih"])                 # (L, H, 4H) [i|f|o|g]
    Whh = _reorder_gates(params["lstm_Whh"])                 # (L, H, 4H)
    b_l = _reorder_gates(params["lstm_b"])                   # (L, 1, 4H)
    S, D, H = pos_W.shape
    L = h0_W.shape[0]
    H4 = 4 * H

    # Fold the positional linears into the layer-0 input-to-hidden projection.
    w0 = jnp.einsum("kde,ef->dkf", pos_W, Wih[0]).reshape(D, S * H4)
    b0 = (jnp.einsum("kue,ef->kuf", pos_b, Wih[0])[:, 0, :] + b_l[0]).reshape(1, S * H4)

    # All h0/c0 init linears as one lane-dense block.
    winit = jnp.concatenate(
        [jnp.transpose(h0_W, (1, 0, 2)).reshape(D, L * H),
         jnp.transpose(c0_W, (1, 0, 2)).reshape(D, L * H)], axis=1)        # (D, 2LH)
    binit = jnp.concatenate(
        [h0_b[:, 0, :].reshape(1, L * H), c0_b[:, 0, :].reshape(1, L * H)], axis=1)

    # Single x-side RHS: [hc0 init | folded positional + layer-0 ih], bf16 weights.
    wx = jnp.concatenate([winit, w0], axis=1).astype(jnp.bfloat16)
    bx = jnp.concatenate([binit, b0], axis=1)                               # f32

    # Output linear padded to a 32-lane multiple for aligned stores.
    outd = params["out_W"].shape[1]
    outp = -(-outd // out_lane_pad) * out_lane_pad
    outw = jnp.zeros((H, outp), jnp.float32).at[:, :outd].set(params["out_W"])
    outb = jnp.zeros((1, outp), jnp.float32).at[:, :outd].set(params["out_b"])

    # Recurrent-side RHS in one lane-concatenated bf16 buffer (wih[0]/bl[0] not shipped).
    wall = jnp.concatenate(
        [Whh[l] for l in range(L)] + [Wih[l] for l in range(1, L)] + [outw],
        axis=1).astype(jnp.bfloat16)                          # (H, (2L-1)*4H + outp)
    ball = jnp.concatenate(
        [b_l[l] for l in range(1, L)] + [outb], axis=1)       # (1, (L-1)*4H + outp) f32

    return dict(wx=wx, bx=bx, wall=wall, ball=ball)


# ----------------------------------------------------------------------------
# EMB2SEQ forward (eval mode): one pallas_call + free trailing reshape/slice.
# ----------------------------------------------------------------------------
def emb2seq_forward(fused, input_init, outd):
    B, _ = input_init.shape
    H = fused["wall"].shape[0]
    H4 = 4 * H
    L = (fused["wall"].shape[1] - fused["ball"].shape[1]) // H4
    outp = fused["ball"].shape[1] - (L - 1) * H4
    S = (fused["bx"].shape[1] - 2 * L * H) // H4
    Bp = -(-B // 8) * 8                      # pad batch to a full 8-row sublane tile

    x_pad = jnp.pad(input_init, ((0, Bp - B), (0, 0)))

    vmem = pl.BlockSpec(memory_space=pltpu.MemorySpace.VMEM)
    out_flat = pl.pallas_call(
        _emb2seq_fused_kernel,
        out_shape=jax.ShapeDtypeStruct((Bp, S * outp), jnp.float32),
        in_specs=[vmem] * 5,
        out_specs=vmem,
        scratch_shapes=[pltpu.VMEM((S * Bp, H), jnp.float32),    # layer output slab
                        pltpu.VMEM((S * Bp, H4), jnp.float32)],  # hoisted gih slab
    )(x_pad, fused["wx"], fused["bx"], fused["wall"], fused["ball"])

    # trailing-dim reshape + pad-stripping slices only: no transpose kernel
    return out_flat.reshape(Bp, S, outp)[:B, :, :outd]


emb2seq_fwd = jax.jit(emb2seq_forward, static_argnums=(2,))


# ----------------------------------------------------------------------------
# Pure-JAX reference (original, unfused layouts; PyTorch gate order) for verification.
# ----------------------------------------------------------------------------
def emb2seq_reference(params, input_init):
    emb = jnp.einsum("bd,kde->kbe", input_init, params["pos_W"]) + params["pos_b"]
    h0 = jnp.einsum("bd,lde->lbe", input_init, params["h0_W"]) + params["h0_b"]
    c0 = jnp.einsum("bd,lde->lbe", input_init, params["c0_W"]) + params["c0_b"]

    H = params["h0_W"].shape[-1]
    seq = emb
    for l in range(params["h0_W"].shape[0]):
        w_ih, w_hh, b = params["lstm_Wih"][l], params["lstm_Whh"][l], params["lstm_b"][l]

        def step(carry, x_t):
            h, c = carry
            gates = x_t @ w_ih + h @ w_hh + b
            i_g = jax.nn.sigmoid(gates[:, 0 * H:1 * H])
            f_g = jax.nn.sigmoid(gates[:, 1 * H:2 * H])
            g_g = jnp.tanh(gates[:, 2 * H:3 * H])
            o_g = jax.nn.sigmoid(gates[:, 3 * H:4 * H])
            c = f_g * c + i_g * g_g
            h = o_g * jnp.tanh(c)
            return (h, c), h

        (_, _), seq = lax.scan(step, (h0[l], c0[l]), seq)

    out = jnp.einsum("sbd,de->sbe", seq, params["out_W"]) + params["out_b"]
    return jnp.transpose(out, (1, 0, 2))


def make_params(key, *, ninp, nhid, outd, nlayers, n_basis):
    ks = iter(jax.random.split(key, 16))
    u = lambda k, shape, lo, hi: jax.random.uniform(k, shape, jnp.float32, lo, hi)
    H = nhid
    lstm_range = 1.0 / math.sqrt(H)

    params = dict(
        # init_linear_arr[i]: Linear(ninp, nhid); weight U(-0.1,0.1), bias U(-0.5,0.5)
        pos_W=u(next(ks), (n_basis, ninp, nhid), -0.1, 0.1),
        pos_b=u(next(ks), (n_basis, 1, nhid), -0.5, 0.5),
        # init_hid_linear_1/2[l]: Linear(nhid, nhid)
        h0_W=u(next(ks), (nlayers, nhid, nhid), -0.1, 0.1),
        h0_b=u(next(ks), (nlayers, 1, nhid), -0.5, 0.5),
        c0_W=u(next(ks), (nlayers, nhid, nhid), -0.1, 0.1),
        c0_b=u(next(ks), (nlayers, 1, nhid), -0.5, 0.5),
        # nn.LSTM(nhid, nhid, nlayers): default init U(-1/sqrt(H), 1/sqrt(H)); gates i,f,g,o
        lstm_Wih=u(next(ks), (nlayers, nhid, 4 * H), -lstm_range, lstm_range),
        lstm_Whh=u(next(ks), (nlayers, H, 4 * H), -lstm_range, lstm_range),
        lstm_b=(u(next(ks), (nlayers, 1, 4 * H), -lstm_range, lstm_range)
                + u(next(ks), (nlayers, 1, 4 * H), -lstm_range, lstm_range)),  # b_ih+b_hh
        # out_linear: weight U(-0.1,0.1), bias zero
        out_W=u(next(ks), (nhid, outd), -0.1, 0.1),
        out_b=jnp.zeros((1, outd), jnp.float32),
    )
    return params


if __name__ == "__main__":
    # small, self-consistent shapes (ninp == nhid required by the 'linear' positional path)
    batch, ninp, nhid, outd, nlayers, n_basis = 4, 32, 32, 24, 2, 8

    key = jax.random.PRNGKey(0)
    k_param, k_x = jax.random.split(key)
    params = make_params(k_param, ninp=ninp, nhid=nhid, outd=outd,
                         nlayers=nlayers, n_basis=n_basis)
    input_init = jax.random.normal(k_x, (batch, ninp), jnp.float32)

    # one-time weight re-layout / fusion, then the single-kernel forward
    fused = prepare_fused_params(params)
    fused = jax.tree_util.tree_map(jax.block_until_ready, fused)

    out = emb2seq_fwd(fused, input_init, outd)
    out = jax.block_until_ready(out)
    assert out.shape == (batch, n_basis, outd), out.shape

    ref = jax.block_until_ready(emb2seq_reference(params, input_init))
    max_err = float(jnp.max(jnp.abs(out - ref)))
    assert max_err < 1e-2, f"mismatch vs reference: {max_err}"

    print("KERNEL_OK")
</pallas_src>

<mosaic_0001>
module attributes {stable_mosaic.version = 11 : i64} {
  func.func @_emb2seq_fused_kernel(%arg0: memref<8x32xf32, #tpu.memory_space<vmem>>, %arg1: memref<32x1152xbf16, #tpu.memory_space<vmem>>, %arg2: memref<1x1152xf32, #tpu.memory_space<vmem>>, %arg3: memref<32x416xbf16, #tpu.memory_space<vmem>>, %arg4: memref<1x160xf32, #tpu.memory_space<vmem>>, %arg5: memref<8x256xf32, #tpu.memory_space<vmem>>, %arg6: memref<64x32xf32, #tpu.memory_space<vmem>>, %arg7: memref<64x128xf32, #tpu.memory_space<vmem>>) attributes {dimension_semantics = [], scalar_prefetch = 0 : i64, scratch_operands = 2 : i64, tpu.core_type = #tpu.core_type<tc>} {
    %c0 = arith.constant 0 : index
    %c0_0 = arith.constant 0 : index
    %0 = vector.load %arg0[%c0, %c0_0] : memref<8x32xf32, #tpu.memory_space<vmem>>, vector<8x32xf32>
    %1 = arith.truncf %0 : vector<8x32xf32> to vector<8x32xbf16>
    %c0_1 = arith.constant 0 : index
    %c0_2 = arith.constant 0 : index
    %2 = vector.load %arg1[%c0_1, %c0_2] : memref<32x1152xbf16, #tpu.memory_space<vmem>>, vector<32x1152xbf16>
    %cst = arith.constant dense<0.000000e+00> : vector<8x1152xf32>
    %3 = tpu.matmul %1, %2, %cst {dimension_numbers = #tpu.dot_dimension_numbers<[1], [0], [0], [1], [0, 0, 1, 1], [], []>} : vector<8x32xbf16>, vector<32x1152xbf16>, vector<8x1152xf32> -> vector<8x1152xf32>
    %c0_3 = arith.constant 0 : index
    %c0_4 = arith.constant 0 : index
    %4 = vector.load %arg2[%c0_3, %c0_4] : memref<1x1152xf32, #tpu.memory_space<vmem>>, vector<1x1152xf32>
    %5 = vector.broadcast %4 : vector<1x1152xf32> to vector<8x1152xf32>
    %6 = arith.addf %3, %5 : vector<8x1152xf32>
    %7 = vector.extract_strided_slice %6 {offsets = [0, 0], sizes = [8, 128], strides = [1, 1]} : vector<8x1152xf32> to vector<8x128xf32>
    %8 = vector.extract_strided_slice %6 {offsets = [0, 128], sizes = [8, 128], strides = [1, 1]} : vector<8x1152xf32> to vector<8x128xf32>
    %c0_5 = arith.constant 0 : index
    %c0_6 = arith.constant 0 : index
    %9 = vector.load %arg7[%c0_5, %c0_6] : memref<64x128xf32, #tpu.memory_space<vmem>>, vector<8x128xf32>
    tpu.vector_store %arg7[%c0_5, %c0_6], %8 {strides = array<i32>} : memref<64x128xf32, #tpu.memory_space<vmem>>, vector<8x128xf32>,
    %10 = vector.extract_strided_slice %6 {offsets = [0, 256], sizes = [8, 128], strides = [1, 1]} : vector<8x1152xf32> to vector<8x128xf32>
    %c8 = arith.constant 8 : index
    %c0_7 = arith.constant 0 : index
    %11 = vector.load %arg7[%c8, %c0_7] : memref<64x128xf32, #tpu.memory_space<vmem>>, vector<8x128xf32>
    tpu.vector_store %arg7[%c8, %c0_7], %10 {strides = array<i32>} : memref<64x128xf32, #tpu.memory_space<vmem>>, vector<8x128xf32>,
    %12 = vector.extract_strided_slice %6 {offsets = [0, 384], sizes = [8, 128], strides = [1, 1]} : vector<8x1152xf32> to vector<8x128xf32>
    %c16 = arith.constant 16 : index
    %c0_8 = arith.constant 0 : index
    %13 = vector.load %arg7[%c16, %c0_8] : memref<64x128xf32, #tpu.memory_space<vmem>>, vector<8x128xf32>
    tpu.vector_store %arg7[%c16, %c0_8], %12 {strides = array<i32>} : memref<64x128xf32, #tpu.memory_space<vmem>>, vector<8x128xf32>,
    %14 = vector.extract_strided_slice %6 {offsets = [0, 512], sizes = [8, 128], strides = [1, 1]} : vector<8x1152xf32> to vector<8x128xf32>
    %c24 = arith.constant 24 : index
    %c0_9 = arith.constant 0 : index
    %15 = vector.load %arg7[%c24, %c0_9] : memref<64x128xf32, #tpu.memory_space<vmem>>, vector<8x128xf32>
    tpu.vector_store %arg7[%c24, %c0_9], %14 {strides = array<i32>} : memref<64x128xf32, #tpu.memory_space<vmem>>, vector<8x128xf32>,
    %16 = vector.extract_strided_slice %6 {offsets = [0, 640], sizes = [8, 128], strides = [1, 1]} : vector<8x1152xf32> to vector<8x128xf32>
    %c32 = arith.constant 32 : index
    %c0_10 = arith.constant 0 : index
    %17 = vector.load %arg7[%c32, %c0_10] : memref<64x128xf32, #tpu.memory_space<vmem>>, vector<8x128xf32>
    tpu.vector_store %arg7[%c32, %c0_10], %16 {strides = array<i32>} : memref<64x128xf32, #tpu.memory_space<vmem>>, vector<8x128xf32>,
    %18 = vector.extract_strided_slice %6 {offsets = [0, 768], sizes = [8, 128], strides = [1, 1]} : vector<8x1152xf32> to vector<8x128xf32>
    %c40 = arith.constant 40 : index
    %c0_11 = arith.constant 0 : index
    %19 = vector.load %arg7[%c40, %c0_11] : memref<64x128xf32, #tpu.memory_space<vmem>>, vector<8x128xf32>
    tpu.vector_store %arg7[%c40, %c0_11], %18 {strides = array<i32>} : memref<64x128xf32, #tpu.memory_space<vmem>>, vector<8x128xf32>,
    %20 = vector.extract_strided_slice %6 {offsets = [0, 896], sizes = [8, 128], strides = [1, 1]} : vector<8x1152xf32> to vector<8x128xf32>
    %c48 = arith.constant 48 : index
    %c0_12 = arith.constant 0 : index
    %21 = vector.load %arg7[%c48, %c0_12] : memref<64x128xf32, #tpu.memory_space<vmem>>, vector<8x128xf32>
    tpu.vector_store %arg7[%c48, %c0_12], %20 {strides = array<i32>} : memref<64x128xf32, #tpu.memory_space<vmem>>, vector<8x128xf32>,
    %22 = vector.extract_strided_slice %6 {offsets = [0, 1024], sizes = [8, 128], strides = [1, 1]} : vector<8x1152xf32> to vector<8x128xf32>
    %c56 = arith.constant 56 : index
    %c0_13 = arith.constant 0 : index
    %23 = vector.load %arg7[%c56, %c0_13] : memref<64x128xf32, #tpu.memory_space<vmem>>, vector<8x128xf32>
    tpu.vector_store %arg7[%c56, %c0_13], %22 {strides = array<i32>} : memref<64x128xf32, #tpu.memory_space<vmem>>, vector<8x128xf32>,
    %24 = vector.extract_strided_slice %7 {offsets = [0, 0], sizes = [8, 32], strides = [1, 1]} : vector<8x128xf32> to vector<8x32xf32>
    %25 = vector.extract_strided_slice %7 {offsets = [0, 64], sizes = [8, 32], strides = [1, 1]} : vector<8x128xf32> to vector<8x32xf32>
    %c0_14 = arith.constant 0 : index
    %c0_15 = arith.constant 0 : index
    %26 = vector.load %arg3[%c0_14, %c0_15] : memref<32x416xbf16, #tpu.memory_space<vmem>>, vector<32x128xbf16>
    %c0_16 = arith.constant 0 : index
    %c0_17 = arith.constant 0 : index
    %27 = vector.load %arg7[%c0_16, %c0_17] : memref<64x128xf32, #tpu.memory_space<vmem>>, vector<8x128xf32>
    %28 = arith.truncf %24 : vector<8x32xf32> to vector<8x32xbf16>
    %cst_18 = arith.constant dense<0.000000e+00> : vector<8x128xf32>
    %29 = tpu.matmul %28, %26, %cst_18 {dimension_numbers = #tpu.dot_dimension_numbers<[1], [0], [0], [1], [0, 0, 1, 1], [], []>} : vector<8x32xbf16>, vector<32x128xbf16>, vector<8x128xf32> -> vector<8x128xf32>
    %30 = arith.addf %27, %29 : vector<8x128xf32>
    %31 = vector.extract_strided_slice %30 {offsets = [0, 0], sizes = [8, 96], strides = [1, 1]} : vector<8x128xf32> to vector<8x96xf32>
    %cst_19 = arith.constant 5.000000e-01 : f32
    %32 = vector.broadcast %cst_19 : f32 to vector<8x96xf32>
    %33 = arith.mulf %32, %31 : vector<8x96xf32>
    %34 = math.tanh %33 : vector<8x96xf32>
    %cst_20 = arith.constant 5.000000e-01 : f32
    %35 = vector.broadcast %cst_20 : f32 to vector<8x96xf32>
    %36 = arith.mulf %35, %34 : vector<8x96xf32>
    %cst_21 = arith.constant 5.000000e-01 : f32
    %37 = vector.broadcast %cst_21 : f32 to vector<8x96xf32>
    %38 = arith.addf %36, %37 : vector<8x96xf32>
    %39 = vector.extract_strided_slice %38 {offsets = [0, 0], sizes = [8, 32], strides = [1, 1]} : vector<8x96xf32> to vector<8x32xf32>
    %40 = vector.extract_strided_slice %38 {offsets = [0, 32], sizes = [8, 32], strides = [1, 1]} : vector<8x96xf32> to vector<8x32xf32>
    %41 = vector.extract_strided_slice %38 {offsets = [0, 64], sizes = [8, 32], strides = [1, 1]} : vector<8x96xf32> to vector<8x32xf32>
    %42 = vector.extract_strided_slice %30 {offsets = [0, 96], sizes = [8, 32], strides = [1, 1]} : vector<8x128xf32> to vector<8x32xf32>
    %43 = math.tanh %42 : vector<8x32xf32>
    %44 = arith.mulf %40, %25 : vector<8x32xf32>
    %45 = arith.mulf %39, %43 : vector<8x32xf32>
    %46 = arith.addf %44, %45 : vector<8x32xf32>
    %47 = math.tanh %46 : vector<8x32xf32>
    %48 = arith.mulf %41, %47 : vector<8x32xf32>
    %c0_22 = arith.constant 0 : index
    %c0_23 = arith.constant 0 : index
    %49 = vector.load %arg6[%c0_22, %c0_23] : memref<64x32xf32, #tpu.memory_space<vmem>>, vector<8x32xf32>
    tpu.vector_store %arg6[%c0_22, %c0_23], %48 {strides = array<i32>} : memref<64x32xf32, #tpu.memory_space<vmem>>, vector<8x32xf32>,
    %c8_24 = arith.constant 8 : index
    %c0_25 = arith.constant 0 : index
    %50 = vector.load %arg7[%c8_24, %c0_25] : memref<64x128xf32, #tpu.memory_space<vmem>>, vector<8x128xf32>
    %51 = arith.truncf %48 : vector<8x32xf32> to vector<8x32xbf16>
    %cst_26 = arith.constant dense<0.000000e+00> : vector<8x128xf32>
    %52 = tpu.matmul %51, %26, %cst_26 {dimension_numbers = #tpu.dot_dimension_numbers<[1], [0], [0], [1], [0, 0, 1, 1], [], []>} : vector<8x32xbf16>, vector<32x128xbf16>, vector<8x128xf32> -> vector<8x128xf32>
    %53 = arith.addf %50, %52 : vector<8x128xf32>
    %54 = vector.extract_strided_slice %53 {offsets = [0, 0], sizes = [8, 96], strides = [1, 1]} : vector<8x128xf32> to vector<8x96xf32>
    %cst_27 = arith.constant 5.000000e-01 : f32
    %55 = vector.broadcast %cst_27 : f32 to vector<8x96xf32>
    %56 = arith.mulf %55, %54 : vector<8x96xf32>
    %57 = math.tanh %56 : vector<8x96xf32>
    %cst_28 = arith.constant 5.000000e-01 : f32
    %58 = vector.broadcast %cst_28 : f32 to vector<8x96xf32>
    %59 = arith.mulf %58, %57 : vector<8x96xf32>
    %cst_29 = arith.constant 5.000000e-01 : f32
    %60 = vector.broadcast %cst_29 : f32 to vector<8x96xf32>
    %61 = arith.addf %59, %60 : vector<8x96xf32>
    %62 = vector.extract_strided_slice %61 {offsets = [0, 0], sizes = [8, 32], strides = [1, 1]} : vector<8x96xf32> to vector<8x32xf32>
    %63 = vector.extract_strided_slice %61 {offsets = [0, 32], sizes = [8, 32], strides = [1, 1]} : vector<8x96xf32> to vector<8x32xf32>
    %64 = vector.extract_strided_slice %61 {offsets = [0, 64], sizes = [8, 32], strides = [1, 1]} : vector<8x96xf32> to vector<8x32xf32>
    %65 = vector.extract_strided_slice %53 {offsets = [0, 96], sizes = [8, 32], strides = [1, 1]} : vector<8x128xf32> to vector<8x32xf32>
    %66 = math.tanh %65 : vector<8x32xf32>
    %67 = arith.mulf %63, %46 : vector<8x32xf32>
    %68 = arith.mulf %62, %66 : vector<8x32xf32>
    %69 = arith.addf %67, %68 : vector<8x32xf32>
    %70 = math.tanh %69 : vector<8x32xf32>
    %71 = arith.mulf %64, %70 : vector<8x32xf32>
    %c8_30 = arith.constant 8 : index
    %c0_31 = arith.constant 0 : index
    %72 = vector.load %arg6[%c8_30, %c0_31] : memref<64x32xf32, #tpu.memory_space<vmem>>, vector<8x32xf32>
    tpu.vector_store %arg6[%c8_30, %c0_31], %71 {strides = array<i32>} : memref<64x32xf32, #tpu.memory_space<vmem>>, vector<8x32xf32>,
    %c16_32 = arith.constant 16 : index
    %c0_33 = arith.constant 0 : index
    %73 = vector.load %arg7[%c16_32, %c0_33] : memref<64x128xf32, #tpu.memory_space<vmem>>, vector<8x128xf32>
    %74 = arith.truncf %71 : vector<8x32xf32> to vector<8x32xbf16>
    %cst_34 = arith.constant dense<0.000000e+00> : vector<8x128xf32>
    %75 = tpu.matmul %74, %26, %cst_34 {dimension_numbers = #tpu.dot_dimension_numbers<[1], [0], [0], [1], [0, 0, 1, 1], [], []>} : vector<8x32xbf16>, vector<32x128xbf16>, vector<8x128xf32> -> vector<8x128xf32>
    %76 = arith.addf %73, %75 : vector<8x128xf32>
    %77 = vector.extract_strided_slice %76 {offsets = [0, 0], sizes = [8, 96], strides = [1, 1]} : vector<8x128xf32> to vector<8x96xf32>
    %cst_35 = arith.constant 5.000000e-01 : f32
    %78 = vector.broadcast %cst_35 : f32 to vector<8x96xf32>
    %79 = arith.mulf %78, %77 : vector<8x96xf32>
    %80 = math.tanh %79 : vector<8x96xf32>
    %cst_36 = arith.constant 5.000000e-01 : f32
    %81 = vector.broadcast %cst_36 : f32 to vector<8x96xf32>
    %82 = arith.mulf %81, %80 : vector<8x96xf32>
    %cst_37 = arith.constant 5.000000e-01 : f32
    %83 = vector.broadcast %cst_37 : f32 to vector<8x96xf32>
    %84 = arith.addf %82, %83 : vector<8x96xf32>
    %85 = vector.extract_strided_slice %84 {offsets = [0, 0], sizes = [8, 32], strides = [1, 1]} : vector<8x96xf32> to vector<8x32xf32>
    %86 = vector.extract_strided_slice %84 {offsets = [0, 32], sizes = [8, 32], strides = [1, 1]} : vector<8x96xf32> to vector<8x32xf32>
    %87 = vector.extract_strided_slice %84 {offsets = [0, 64], sizes = [8, 32], strides = [1, 1]} : vector<8x96xf32> to vector<8x32xf32>
    %88 = vector.extract_strided_slice %76 {offsets = [0, 96], sizes = [8, 32], strides = [1, 1]} : vector<8x128xf32> to vector<8x32xf32>
    %89 = math.tanh %88 : vector<8x32xf32>
    %90 = arith.mulf %86, %69 : vector<8x32xf32>
    %91 = arith.mulf %85, %89 : vector<8x32xf32>
    %92 = arith.addf %90, %91 : vector<8x32xf32>
    %93 = math.tanh %92 : vector<8x32xf32>
    %94 = arith.mulf %87, %93 : vector<8x32xf32>
    %c16_38 = arith.constant 16 : index
    %c0_39 = arith.constant 0 : index
    %95 = vector.load %arg6[%c16_38, %c0_39] : memref<64x32xf32, #tpu.memory_space<vmem>>, vector<8x32xf32>
    tpu.vector_store %arg6[%c16_38, %c0_39], %94 {strides = array<i32>} : memref<64x32xf32, #tpu.memory_space<vmem>>, vector<8x32xf32>,
    %c24_40 = arith.constant 24 : index
    %c0_41 = arith.constant 0 : index
    %96 = vector.load %arg7[%c24_40, %c0_41] : memref<64x128xf32, #tpu.memory_space<vmem>>, vector<8x128xf32>
    %97 = arith.truncf %94 : vector<8x32xf32> to vector<8x32xbf16>
    %cst_42 = arith.constant dense<0.000000e+00> : vector<8x128xf32>
    %98 = tpu.matmul %97, %26, %cst_42 {dimension_numbers = #tpu.dot_dimension_numbers<[1], [0], [0], [1], [0, 0, 1, 1], [], []>} : vector<8x32xbf16>, vector<32x128xbf16>, vector<8x128xf32> -> vector<8x128xf32>
    %99 = arith.addf %96, %98 : vector<8x128xf32>
    %100 = vector.extract_strided_slice %99 {offsets = [0, 0], sizes = [8, 96], strides = [1, 1]} : vector<8x128xf32> to vector<8x96xf32>
    %cst_43 = arith.constant 5.000000e-01 : f32
    %101 = vector.broadcast %cst_43 : f32 to vector<8x96xf32>
    %102 = arith.mulf %101, %100 : vector<8x96xf32>
    %103 = math.tanh %102 : vector<8x96xf32>
    %cst_44 = arith.constant 5.000000e-01 : f32
    %104 = vector.broadcast %cst_44 : f32 to vector<8x96xf32>
    %105 = arith.mulf %104, %103 : vector<8x96xf32>
    %cst_45 = arith.constant 5.000000e-01 : f32
    %106 = vector.broadcast %cst_45 : f32 to vector<8x96xf32>
    %107 = arith.addf %105, %106 : vector<8x96xf32>
    %108 = vector.extract_strided_slice %107 {offsets = [0, 0], sizes = [8, 32], strides = [1, 1]} : vector<8x96xf32> to vector<8x32xf32>
    %109 = vector.extract_strided_slice %107 {offsets = [0, 32], sizes = [8, 32], strides = [1, 1]} : vector<8x96xf32> to vector<8x32xf32>
    %110 = vector.extract_strided_slice %107 {offsets = [0, 64], sizes = [8, 32], strides = [1, 1]} : vector<8x96xf32> to vector<8x32xf32>
    %111 = vector.extract_strided_slice %99 {offsets = [0, 96], sizes = [8, 32], strides = [1, 1]} : vector<8x128xf32> to vector<8x32xf32>
    %112 = math.tanh %111 : vector<8x32xf32>
    %113 = arith.mulf %109, %92 : vector<8x32xf32>
    %114 = arith.mulf %108, %112 : vector<8x32xf32>
    %115 = arith.addf %113, %114 : vector<8x32xf32>
    %116 = math.tanh %115 : vector<8x32xf32>
    %117 = arith.mulf %110, %116 : vector<8x32xf32>
    %c24_46 = arith.constant 24 : index
    %c0_47 = arith.constant 0 : index
    %118 = vector.load %arg6[%c24_46, %c0_47] : memref<64x32xf32, #tpu.memory_space<vmem>>, vector<8x32xf32>
    tpu.vector_store %arg6[%c24_46, %c0_47], %117 {strides = array<i32>} : memref<64x32xf32, #tpu.memory_space<vmem>>, vector<8x32xf32>,
    %c32_48 = arith.constant 32 : index
    %c0_49 = arith.constant 0 : index
    %119 = vector.load %arg7[%c32_48, %c0_49] : memref<64x128xf32, #tpu.memory_space<vmem>>, vector<8x128xf32>
    %120 = arith.truncf %117 : vector<8x32xf32> to vector<8x32xbf16>
    %cst_50 = arith.constant dense<0.000000e+00> : vector<8x128xf32>
    %121 = tpu.matmul %120, %26, %cst_50 {dimension_numbers = #tpu.dot_dimension_numbers<[1], [0], [0], [1], [0, 0, 1, 1], [], []>} : vector<8x32xbf16>, vector<32x128xbf16>, vector<8x128xf32> -> vector<8x128xf32>
    %122 = arith.addf %119, %121 : vector<8x128xf32>
    %123 = vector.extract_strided_slice %122 {offsets = [0, 0], sizes = [8, 96], strides = [1, 1]} : vector<8x128xf32> to vector<8x96xf32>
    %cst_51 = arith.constant 5.000000e-01 : f32
    %124 = vector.broadcast %cst_51 : f32 to vector<8x96xf32>
    %125 = arith.mulf %124, %123 : vector<8x96xf32>
    %126 = math.tanh %125 : vector<8x96xf32>
    %cst_52 = arith.constant 5.000000e-01 : f32
    %127 = vector.broadcast %cst_52 : f32 to vector<8x96xf32>
    %128 = arith.mulf %127, %126 : vector<8x96xf32>
    %cst_53 = arith.constant 5.000000e-01 : f32
    %129 = vector.broadcast %cst_53 : f32 to vector<8x96xf32>
    %130 = arith.addf %128, %129 : vector<8x96xf32>
    %131 = vector.extract_strided_slice %130 {offsets = [0, 0], sizes = [8, 32], strides = [1, 1]} : vector<8x96xf32> to vector<8x32xf32>
    %132 = vector.extract_strided_slice %130 {offsets = [0, 32], sizes = [8, 32], strides = [1, 1]} : vector<8x96xf32> to vector<8x32xf32>
    %133 = vector.extract_strided_slice %130 {offsets = [0, 64], sizes = [8, 32], strides = [1, 1]} : vector<8x96xf32> to vector<8x32xf32>
    %134 = vector.extract_strided_slice %122 {offsets = [0, 96], sizes = [8, 32], strides = [1, 1]} : vector<8x128xf32> to vector<8x32xf32>
    %135 = math.tanh %134 : vector<8x32xf32>
    %136 = arith.mulf %132, %115 : vector<8x32xf32>
    %137 = arith.mulf %131, %135 : vector<8x32xf32>
    %138 = arith.addf %136, %137 : vector<8x32xf32>
    %139 = math.tanh %138 : vector<8x32xf32>
    %140 = arith.mulf %133, %139 : vector<8x32xf32>
    %c32_54 = arith.constant 32 : index
    %c0_55 = arith.constant 0 : index
    %141 = vector.load %arg6[%c32_54, %c0_55] : memref<64x32xf32, #tpu.memory_space<vmem>>, vector<8x32xf32>
    tpu.vector_store %arg6[%c32_54, %c0_55], %140 {strides = array<i32>} : memref<64x32xf32, #tpu.memory_space<vmem>>, vector<8x32xf32>,
    %c40_56 = arith.constant 40 : index
    %c0_57 = arith.constant 0 : index
    %142 = vector.load %arg7[%c40_56, %c0_57] : memref<64x128xf32, #tpu.memory_space<vmem>>, vector<8x128xf32>
    %143 = arith.truncf %140 : vector<8x32xf32> to vector<8x32xbf16>
    %cst_58 = arith.constant dense<0.000000e+00> : vector<8x128xf32>
    %144 = tpu.matmul %143, %26, %cst_58 {dimension_numbers = #tpu.dot_dimension_numbers<[1], [0], [0], [1], [0, 0, 1, 1], [], []>} : vector<8x32xbf16>, vector<32x128xbf16>, vector<8x128xf32> -> vector<8x128xf32>
    %145 = arith.addf %142, %144 : vector<8x128xf32>
    %146 = vector.extract_strided_slice %145 {offsets = [0, 0], sizes = [8, 96], strides = [1, 1]} : vector<8x128xf32> to vector<8x96xf32>
    %cst_59 = arith.constant 5.000000e-01 : f32
    %147 = vector.broadcast %cst_59 : f32 to vector<8x96xf32>
    %148 = arith.mulf %147, %146 : vector<8x96xf32>
    %149 = math.tanh %148 : vector<8x96xf32>
    %cst_60 = arith.constant 5.000000e-01 : f32
    %150 = vector.broadcast %cst_60 : f32 to vector<8x96xf32>
    %151 = arith.mulf %150, %149 : vector<8x96xf32>
    %cst_61 = arith.constant 5.000000e-01 : f32
    %152 = vector.broadcast %cst_61 : f32 to vector<8x96xf32>
    %153 = arith.addf %151, %152 : vector<8x96xf32>
    %154 = vector.extract_strided_slice %153 {offsets = [0, 0], sizes = [8, 32], strides = [1, 1]} : vector<8x96xf32> to vector<8x32xf32>
    %155 = vector.extract_strided_slice %153 {offsets = [0, 32], sizes = [8, 32], strides = [1, 1]} : vector<8x96xf32> to vector<8x32xf32>
    %156 = vector.extract_strided_slice %153 {offsets = [0, 64], sizes = [8, 32], strides = [1, 1]} : vector<8x96xf32> to vector<8x32xf32>
    %157 = vector.extract_strided_slice %145 {offsets = [0, 96], sizes = [8, 32], strides = [1, 1]} : vector<8x128xf32> to vector<8x32xf32>
    %158 = math.tanh %157 : vector<8x32xf32>
    %159 = arith.mulf %155, %138 : vector<8x32xf32>
    %160 = arith.mulf %154, %158 : vector<8x32xf32>
    %161 = arith.addf %159, %160 : vector<8x32xf32>
    %162 = math.tanh %161 : vector<8x32xf32>
    %163 = arith.mulf %156, %162 : vector<8x32xf32>
    %c40_62 = arith.constant 40 : index
    %c0_63 = arith.constant 0 : index
    %164 = vector.load %arg6[%c40_62, %c0_63] : memref<64x32xf32, #tpu.memory_space<vmem>>, vector<8x32xf32>
    tpu.vector_store %arg6[%c40_62, %c0_63], %163 {strides = array<i32>} : memref<64x32xf32, #tpu.memory_space<vmem>>, vector<8x32xf32>,
    %c48_64 = arith.constant 48 : index
    %c0_65 = arith.constant 0 : index
    %165 = vector.load %arg7[%c48_64, %c0_65] : memref<64x128xf32, #tpu.memory_space<vmem>>, vector<8x128xf32>
    %166 = arith.truncf %163 : vector<8x32xf32> to vector<8x32xbf16>
    %cst_66 = arith.constant dense<0.000000e+00> : vector<8x128xf32>
    %167 = tpu.matmul %166, %26, %cst_66 {dimension_numbers = #tpu.dot_dimension_numbers<[1], [0], [0], [1], [0, 0, 1, 1], [], []>} : vector<8x32xbf16>, vector<32x128xbf16>, vector<8x128xf32> -> vector<8x128xf32>
    %168 = arith.addf %165, %167 : vector<8x128xf32>
    %169 = vector.extract_strided_slice %168 {offsets = [0, 0], sizes = [8, 96], strides = [1, 1]} : vector<8x128xf32> to vector<8x96xf32>
    %cst_67 = arith.constant 5.000000e-01 : f32
    %170 = vector.broadcast %cst_67 : f32 to vector<8x96xf32>
    %171 = arith.mulf %170, %169 : vector<8x96xf32>
    %172 = math.tanh %171 : vector<8x96xf32>
    %cst_68 = arith.constant 5.000000e-01 : f32
    %173 = vector.broadcast %cst_68 : f32 to vector<8x96xf32>
    %174 = arith.mulf %173, %172 : vector<8x96xf32>
    %cst_69 = arith.constant 5.000000e-01 : f32
    %175 = vector.broadcast %cst_69 : f32 to vector<8x96xf32>
    %176 = arith.addf %174, %175 : vector<8x96xf32>
    %177 = vector.extract_strided_slice %176 {offsets = [0, 0], sizes = [8, 32], strides = [1, 1]} : vector<8x96xf32> to vector<8x32xf32>
    %178 = vector.extract_strided_slice %176 {offsets = [0, 32], sizes = [8, 32], strides = [1, 1]} : vector<8x96xf32> to vector<8x32xf32>
    %179 = vector.extract_strided_slice %176 {offsets = [0, 64], sizes = [8, 32], strides = [1, 1]} : vector<8x96xf32> to vector<8x32xf32>
    %180 = vector.extract_strided_slice %168 {offsets = [0, 96], sizes = [8, 32], strides = [1, 1]} : vector<8x128xf32> to vector<8x32xf32>
    %181 = math.tanh %180 : vector<8x32xf32>
    %182 = arith.mulf %178, %161 : vector<8x32xf32>
    %183 = arith.mulf %177, %181 : vector<8x32xf32>
    %184 = arith.addf %182, %183 : vector<8x32xf32>
    %185 = math.tanh %184 : vector<8x32xf32>
    %186 = arith.mulf %179, %185 : vector<8x32xf32>
    %c48_70 = arith.constant 48 : index
    %c0_71 = arith.constant 0 : index
    %187 = vector.load %arg6[%c48_70, %c0_71] : memref<64x32xf32, #tpu.memory_space<vmem>>, vector<8x32xf32>
    tpu.vector_store %arg6[%c48_70, %c0_71], %186 {strides = array<i32>} : memref<64x32xf32, #tpu.memory_space<vmem>>, vector<8x32xf32>,
    %c56_72 = arith.constant 56 : index
    %c0_73 = arith.constant 0 : index
    %188 = vector.load %arg7[%c56_72, %c0_73] : memref<64x128xf32, #tpu.memory_space<vmem>>, vector<8x128xf32>
    %189 = arith.truncf %186 : vector<8x32xf32> to vector<8x32xbf16>
    %cst_74 = arith.constant dense<0.000000e+00> : vector<8x128xf32>
    %190 = tpu.matmul %189, %26, %cst_74 {dimension_numbers = #tpu.dot_dimension_numbers<[1], [0], [0], [1], [0, 0, 1, 1], [], []>} : vector<8x32xbf16>, vector<32x128xbf16>, vector<8x128xf32> -> vector<8x128xf32>
    %191 = arith.addf %188, %190 : vector<8x128xf32>
    %192 = vector.extract_strided_slice %191 {offsets = [0, 0], sizes = [8, 96], strides = [1, 1]} : vector<8x128xf32> to vector<8x96xf32>
    %cst_75 = arith.constant 5.000000e-01 : f32
    %193 = vector.broadcast %cst_75 : f32 to vector<8x96xf32>
    %194 = arith.mulf %193, %192 : vector<8x96xf32>
    %195 = math.tanh %194 : vector<8x96xf32>
    %cst_76 = arith.constant 5.000000e-01 : f32
    %196 = vector.broadcast %cst_76 : f32 to vector<8x96xf32>
    %197 = arith.mulf %196, %195 : vector<8x96xf32>
    %cst_77 = arith.constant 5.000000e-01 : f32
    %198 = vector.broadcast %cst_77 : f32 to vector<8x96xf32>
    %199 = arith.addf %197, %198 : vector<8x96xf32>
    %200 = vector.extract_strided_slice %199 {offsets = [0, 0], sizes = [8, 32], strides = [1, 1]} : vector<8x96xf32> to vector<8x32xf32>
    %201 = vector.extract_strided_slice %199 {offsets = [0, 32], sizes = [8, 32], strides = [1, 1]} : vector<8x96xf32> to vector<8x32xf32>
    %202 = vector.extract_strided_slice %199 {offsets = [0, 64], sizes = [8, 32], strides = [1, 1]} : vector<8x96xf32> to vector<8x32xf32>
    %203 = vector.extract_strided_slice %191 {offsets = [0, 96], sizes = [8, 32], strides = [1, 1]} : vector<8x128xf32> to vector<8x32xf32>
    %204 = math.tanh %203 : vector<8x32xf32>
    %205 = arith.mulf %201, %184 : vector<8x32xf32>
    %206 = arith.mulf %200, %204 : vector<8x32xf32>
    %207 = arith.addf %205, %206 : vector<8x32xf32>
    %208 = math.tanh %207 : vector<8x32xf32>
    %209 = arith.mulf %202, %208 : vector<8x32xf32>
    %c56_78 = arith.constant 56 : index
    %c0_79 = arith.constant 0 : index
    %210 = vector.load %arg6[%c56_78, %c0_79] : memref<64x32xf32, #tpu.memory_space<vmem>>, vector<8x32xf32>
    tpu.vector_store %arg6[%c56_78, %c0_79], %209 {strides = array<i32>} : memref<64x32xf32, #tpu.memory_space<vmem>>, vector<8x32xf32>,
    %c0_80 = arith.constant 0 : index
    %c256 = arith.constant 256 : index
    %211 = vector.load %arg3[%c0_80, %c256] : memref<32x416xbf16, #tpu.memory_space<vmem>>, vector<32x128xbf16>
    %c0_81 = arith.constant 0 : index
    %c0_82 = arith.constant 0 : index
    %212 = vector.load %arg4[%c0_81, %c0_82] : memref<1x160xf32, #tpu.memory_space<vmem>>, vector<1x128xf32>
    %c0_83 = arith.constant 0 : index
    %c0_84 = arith.constant 0 : index
    %213 = vector.load %arg6[%c0_83, %c0_84] : memref<64x32xf32, #tpu.memory_space<vmem>>, vector<64x32xf32>
    %214 = arith.truncf %213 : vector<64x32xf32> to vector<64x32xbf16>
    %cst_85 = arith.constant dense<0.000000e+00> : vector<64x128xf32>
    %215 = tpu.matmul %214, %211, %cst_85 {dimension_numbers = #tpu.dot_dimension_numbers<[1], [0], [0], [1], [0, 0, 1, 1], [], []>} : vector<64x32xbf16>, vector<32x128xbf16>, vector<64x128xf32> -> vector<64x128xf32>
    %216 = vector.broadcast %212 : vector<1x128xf32> to vector<64x128xf32>
    %217 = arith.addf %215, %216 : vector<64x128xf32>
    %c0_86 = arith.constant 0 : index
    %c0_87 = arith.constant 0 : index
    %218 = vector.load %arg7[%c0_86, %c0_87] : memref<64x128xf32, #tpu.memory_space<vmem>>, vector<64x128xf32>
    tpu.vector_store %arg7[%c0_86, %c0_87], %217 {strides = array<i32>} : memref<64x128xf32, #tpu.memory_space<vmem>>, vector<64x128xf32>,
    %219 = vector.extract_strided_slice %7 {offsets = [0, 32], sizes = [8, 32], strides = [1, 1]} : vector<8x128xf32> to vector<8x32xf32>
    %220 = vector.extract_strided_slice %7 {offsets = [0, 96], sizes = [8, 32], strides = [1, 1]} : vector<8x128xf32> to vector<8x32xf32>
    %c0_88 = arith.constant 0 : index
    %c128 = arith.constant 128 : index
    %221 = vector.load %arg3[%c0_88, %c128] : memref<32x416xbf16, #tpu.memory_space<vmem>>, vector<32x128xbf16>
    %c0_89 = arith.constant 0 : index
    %c0_90 = arith.constant 0 : index
    %222 = vector.load %arg7[%c0_89, %c0_90] : memref<64x128xf32, #tpu.memory_space<vmem>>, vector<8x128xf32>
    %223 = arith.truncf %219 : vector<8x32xf32> to vector<8x32xbf16>
    %cst_91 = arith.constant dense<0.000000e+00> : vector<8x128xf32>
    %224 = tpu.matmul %223, %221, %cst_91 {dimension_numbers = #tpu.dot_dimension_numbers<[1], [0], [0], [1], [0, 0, 1, 1], [], []>} : vector<8x32xbf16>, vector<32x128xbf16>, vector<8x128xf32> -> vector<8x128xf32>
    %225 = arith.addf %222, %224 : vector<8x128xf32>
    %226 = vector.extract_strided_slice %225 {offsets = [0, 0], sizes = [8, 96], strides = [1, 1]} : vector<8x128xf32> to vector<8x96xf32>
    %cst_92 = arith.constant 5.000000e-01 : f32
    %227 = vector.broadcast %cst_92 : f32 to vector<8x96xf32>
    %228 = arith.mulf %227, %226 : vector<8x96xf32>
    %229 = math.tanh %228 : vector<8x96xf32>
    %cst_93 = arith.constant 5.000000e-01 : f32
    %230 = vector.broadcast %cst_93 : f32 to vector<8x96xf32>
    %231 = arith.mulf %230, %229 : vector<8x96xf32>
    %cst_94 = arith.constant 5.000000e-01 : f32
    %232 = vector.broadcast %cst_94 : f32 to vector<8x96xf32>
    %233 = arith.addf %231, %232 : vector<8x96xf32>
    %234 = vector.extract_strided_slice %233 {offsets = [0, 0], sizes = [8, 32], strides = [1, 1]} : vector<8x96xf32> to vector<8x32xf32>
    %235 = vector.extract_strided_slice %233 {offsets = [0, 32], sizes = [8, 32], strides = [1, 1]} : vector<8x96xf32> to vector<8x32xf32>
    %236 = vector.extract_strided_slice %233 {offsets = [0, 64], sizes = [8, 32], strides = [1, 1]} : vector<8x96xf32> to vector<8x32xf32>
    %237 = vector.extract_strided_slice %225 {offsets = [0, 96], sizes = [8, 32], strides = [1, 1]} : vector<8x128xf32> to vector<8x32xf32>
    %238 = math.tanh %237 : vector<8x32xf32>
    %239 = arith.mulf %235, %220 : vector<8x32xf32>
    %240 = arith.mulf %234, %238 : vector<8x32xf32>
    %241 = arith.addf %239, %240 : vector<8x32xf32>
    %242 = math.tanh %241 : vector<8x32xf32>
    %243 = arith.mulf %236, %242 : vector<8x32xf32>
    %c0_95 = arith.constant 0 : index
    %c0_96 = arith.constant 0 : index
    %244 = vector.load %arg6[%c0_95, %c0_96] : memref<64x32xf32, #tpu.memory_space<vmem>>, vector<8x32xf32>
    tpu.vector_store %arg6[%c0_95, %c0_96], %243 {strides = array<i32>} : memref<64x32xf32, #tpu.memory_space<vmem>>, vector<8x32xf32>,
    %c8_97 = arith.constant 8 : index
    %c0_98 = arith.constant 0 : index
    %245 = vector.load %arg7[%c8_97, %c0_98] : memref<64x128xf32, #tpu.memory_space<vmem>>, vector<8x128xf32>
    %246 = arith.truncf %243 : vector<8x32xf32> to vector<8x32xbf16>
    %cst_99 = arith.constant dense<0.000000e+00> : vector<8x128xf32>
    %247 = tpu.matmul %246, %221, %cst_99 {dimension_numbers = #tpu.dot_dimension_numbers<[1], [0], [0], [1], [0, 0, 1, 1], [], []>} : vector<8x32xbf16>, vector<32x128xbf16>, vector<8x128xf32> -> vector<8x128xf32>
    %248 = arith.addf %245, %247 : vector<8x128xf32>
    %249 = vector.extract_strided_slice %248 {offsets = [0, 0], sizes = [8, 96], strides = [1, 1]} : vector<8x128xf32> to vector<8x96xf32>
    %cst_100 = arith.constant 5.000000e-01 : f32
    %250 = vector.broadcast %cst_100 : f32 to vector<8x96xf32>
    %251 = arith.mulf %250, %249 : vector<8x96xf32>
    %252 = math.tanh %251 : vector<8x96xf32>
    %cst_101 = arith.constant 5.000000e-01 : f32
    %253 = vector.broadcast %cst_101 : f32 to vector<8x96xf32>
    %254 = arith.mulf %253, %252 : vector<8x96xf32>
    %cst_102 = arith.constant 5.000000e-01 : f32
    %255 = vector.broadcast %cst_102 : f32 to vector<8x96xf32>
    %256 = arith.addf %254, %255 : vector<8x96xf32>
    %257 = vector.extract_strided_slice %256 {offsets = [0, 0], sizes = [8, 32], strides = [1, 1]} : vector<8x96xf32> to vector<8x32xf32>
    %258 = vector.extract_strided_slice %256 {offsets = [0, 32], sizes = [8, 32], strides = [1, 1]} : vector<8x96xf32> to vector<8x32xf32>
    %259 = vector.extract_strided_slice %256 {offsets = [0, 64], sizes = [8, 32], strides = [1, 1]} : vector<8x96xf32> to vector<8x32xf32>
    %260 = vector.extract_strided_slice %248 {offsets = [0, 96], sizes = [8, 32], strides = [1, 1]} : vector<8x128xf32> to vector<8x32xf32>
    %261 = math.tanh %260 : vector<8x32xf32>
    %262 = arith.mulf %258, %241 : vector<8x32xf32>
    %263 = arith.mulf %257, %261 : vector<8x32xf32>
    %264 = arith.addf %262, %263 : vector<8x32xf32>
    %265 = math.tanh %264 : vector<8x32xf32>
    %266 = arith.mulf %259, %265 : vector<8x32xf32>
    %c8_103 = arith.constant 8 : index
    %c0_104 = arith.constant 0 : index
    %267 = vector.load %arg6[%c8_103, %c0_104] : memref<64x32xf32, #tpu.memory_space<vmem>>, vector<8x32xf32>
    tpu.vector_store %arg6[%c8_103, %c0_104], %266 {strides = array<i32>} : memref<64x32xf32, #tpu.memory_space<vmem>>, vector<8x32xf32>,
    %c16_105 = arith.constant 16 : index
    %c0_106 = arith.constant 0 : index
    %268 = vector.load %arg7[%c16_105, %c0_106] : memref<64x128xf32, #tpu.memory_space<vmem>>, vector<8x128xf32>
    %269 = arith.truncf %266 : vector<8x32xf32> to vector<8x32xbf16>
    %cst_107 = arith.constant dense<0.000000e+00> : vector<8x128xf32>
    %270 = tpu.matmul %269, %221, %cst_107 {dimension_numbers = #tpu.dot_dimension_numbers<[1], [0], [0], [1], [0, 0, 1, 1], [], []>} : vector<8x32xbf16>, vector<32x128xbf16>, vector<8x128xf32> -> vector<8x128xf32>
    %271 = arith.addf %268, %270 : vector<8x128xf32>
    %272 = vector.extract_strided_slice %271 {offsets = [0, 0], sizes = [8, 96], strides = [1, 1]} : vector<8x128xf32> to vector<8x96xf32>
    %cst_108 = arith.constant 5.000000e-01 : f32
    %273 = vector.broadcast %cst_108 : f32 to vector<8x96xf32>
    %274 = arith.mulf %273, %272 : vector<8x96xf32>
    %275 = math.tanh %274 : vector<8x96xf32>
    %cst_109 = arith.constant 5.000000e-01 : f32
    %276 = vector.broadcast %cst_109 : f32 to vector<8x96xf32>
    %277 = arith.mulf %276, %275 : vector<8x96xf32>
    %cst_110 = arith.constant 5.000000e-01 : f32
    %278 = vector.broadcast %cst_110 : f32 to vector<8x96xf32>
    %279 = arith.addf %277, %278 : vector<8x96xf32>
    %280 = vector.extract_strided_slice %279 {offsets = [0, 0], sizes = [8, 32], strides = [1, 1]} : vector<8x96xf32> to vector<8x32xf32>
    %281 = vector.extract_strided_slice %279 {offsets = [0, 32], sizes = [8, 32], strides = [1, 1]} : vector<8x96xf32> to vector<8x32xf32>
    %282 = vector.extract_strided_slice %279 {offsets = [0, 64], sizes = [8, 32], strides = [1, 1]} : vector<8x96xf32> to vector<8x32xf32>
    %283 = vector.extract_strided_slice %271 {offsets = [0, 96], sizes = [8, 32], strides = [1, 1]} : vector<8x128xf32> to vector<8x32xf32>
    %284 = math.tanh %283 : vector<8x32xf32>
    %285 = arith.mulf %281, %264 : vector<8x32xf32>
    %286 = arith.mulf %280, %284 : vector<8x32xf32>
    %287 = arith.addf %285, %286 : vector<8x32xf32>
    %288 = math.tanh %287 : vector<8x32xf32>
    %289 = arith.mulf %282, %288 : vector<8x32xf32>
    %c16_111 = arith.constant 16 : index
    %c0_112 = arith.constant 0 : index
    %290 = vector.load %arg6[%c16_111, %c0_112] : memref<64x32xf32, #tpu.memory_space<vmem>>, vector<8x32xf32>
    tpu.vector_store %arg6[%c16_111, %c0_112], %289 {strides = array<i32>} : memref<64x32xf32, #tpu.memory_space<vmem>>, vector<8x32xf32>,
    %c24_113 = arith.constant 24 : index
    %c0_114 = arith.constant 0 : index
    %291 = vector.load %arg7[%c24_113, %c0_114] : memref<64x128xf32, #tpu.memory_space<vmem>>, vector<8x128xf32>
    %292 = arith.truncf %289 : vector<8x32xf32> to vector<8x32xbf16>
    %cst_115 = arith.constant dense<0.000000e+00> : vector<8x128xf32>
    %293 = tpu.matmul %292, %221, %cst_115 {dimension_numbers = #tpu.dot_dimension_numbers<[1], [0], [0], [1], [0, 0, 1, 1], [], []>} : vector<8x32xbf16>, vector<32x128xbf16>, vector<8x128xf32> -> vector<8x128xf32>
    %294 = arith.addf %291, %293 : vector<8x128xf32>
    %295 = vector.extract_strided_slice %294 {offsets = [0, 0], sizes = [8, 96], strides = [1, 1]} : vector<8x128xf32> to vector<8x96xf32>
    %cst_116 = arith.constant 5.000000e-01 : f32
    %296 = vector.broadcast %cst_116 : f32 to vector<8x96xf32>
    %297 = arith.mulf %296, %295 : vector<8x96xf32>
    %298 = math.tanh %297 : vector<8x96xf32>
    %cst_117 = arith.constant 5.000000e-01 : f32
    %299 = vector.broadcast %cst_117 : f32 to vector<8x96xf32>
    %300 = arith.mulf %299, %298 : vector<8x96xf32>
    %cst_118 = arith.constant 5.000000e-01 : f32
    %301 = vector.broadcast %cst_118 : f32 to vector<8x96xf32>
    %302 = arith.addf %300, %301 : vector<8x96xf32>
    %303 = vector.extract_strided_slice %302 {offsets = [0, 0], sizes = [8, 32], strides = [1, 1]} : vector<8x96xf32> to vector<8x32xf32>
    %304 = vector.extract_strided_slice %302 {offsets = [0, 32], sizes = [8, 32], strides = [1, 1]} : vector<8x96xf32> to vector<8x32xf32>
    %305 = vector.extract_strided_slice %302 {offsets = [0, 64], sizes = [8, 32], strides = [1, 1]} : vector<8x96xf32> to vector<8x32xf32>
    %306 = vector.extract_strided_slice %294 {offsets = [0, 96], sizes = [8, 32], strides = [1, 1]} : vector<8x128xf32> to vector<8x32xf32>
    %307 = math.tanh %306 : vector<8x32xf32>
    %308 = arith.mulf %304, %287 : vector<8x32xf32>
    %309 = arith.mulf %303, %307 : vector<8x32xf32>
    %310 = arith.addf %308, %309 : vector<8x32xf32>
    %311 = math.tanh %310 : vector<8x32xf32>
    %312 = arith.mulf %305, %311 : vector<8x32xf32>
    %c24_119 = arith.constant 24 : index
    %c0_120 = arith.constant 0 : index
    %313 = vector.load %arg6[%c24_119, %c0_120] : memref<64x32xf32, #tpu.memory_space<vmem>>, vector<8x32xf32>
    tpu.vector_store %arg6[%c24_119, %c0_120], %312 {strides = array<i32>} : memref<64x32xf32, #tpu.memory_space<vmem>>, vector<8x32xf32>,
    %c32_121 = arith.constant 32 : index
    %c0_122 = arith.constant 0 : index
    %314 = vector.load %arg7[%c32_121, %c0_122] : memref<64x128xf32, #tpu.memory_space<vmem>>, vector<8x128xf32>
    %315 = arith.truncf %312 : vector<8x32xf32> to vector<8x32xbf16>
    %cst_123 = arith.constant dense<0.000000e+00> : vector<8x128xf32>
    %316 = tpu.matmul %315, %221, %cst_123 {dimension_numbers = #tpu.dot_dimension_numbers<[1], [0], [0], [1], [0, 0, 1, 1], [], []>} : vector<8x32xbf16>, vector<32x128xbf16>, vector<8x128xf32> -> vector<8x128xf32>
    %317 = arith.addf %314, %316 : vector<8x128xf32>
    %318 = vector.extract_strided_slice %317 {offsets = [0, 0], sizes = [8, 96], strides = [1, 1]} : vector<8x128xf32> to vector<8x96xf32>
    %cst_124 = arith.constant 5.000000e-01 : f32
    %319 = vector.broadcast %cst_124 : f32 to vector<8x96xf32>
    %320 = arith.mulf %319, %318 : vector<8x96xf32>
    %321 = math.tanh %320 : vector<8x96xf32>
    %cst_125 = arith.constant 5.000000e-01 : f32
    %322 = vector.broadcast %cst_125 : f32 to vector<8x96xf32>
    %323 = arith.mulf %322, %321 : vector<8x96xf32>
    %cst_126 = arith.constant 5.000000e-01 : f32
    %324 = vector.broadcast %cst_126 : f32 to vector<8x96xf32>
    %325 = arith.addf %323, %324 : vector<8x96xf32>
    %326 = vector.extract_strided_slice %325 {offsets = [0, 0], sizes = [8, 32], strides = [1, 1]} : vector<8x96xf32> to vector<8x32xf32>
    %327 = vector.extract_strided_slice %325 {offsets = [0, 32], sizes = [8, 32], strides = [1, 1]} : vector<8x96xf32> to vector<8x32xf32>
    %328 = vector.extract_strided_slice %325 {offsets = [0, 64], sizes = [8, 32], strides = [1, 1]} : vector<8x96xf32> to vector<8x32xf32>
    %329 = vector.extract_strided_slice %317 {offsets = [0, 96], sizes = [8, 32], strides = [1, 1]} : vector<8x128xf32> to vector<8x32xf32>
    %330 = math.tanh %329 : vector<8x32xf32>
    %331 = arith.mulf %327, %310 : vector<8x32xf32>
    %332 = arith.mulf %326, %330 : vector<8x32xf32>
    %333 = arith.addf %331, %332 : vector<8x32xf32>
    %334 = math.tanh %333 : vector<8x32xf32>
    %335 = arith.mulf %328, %334 : vector<8x32xf32>
    %c32_127 = arith.constant 32 : index
    %c0_128 = arith.constant 0 : index
    %336 = vector.load %arg6[%c32_127, %c0_128] : memref<64x32xf32, #tpu.memory_space<vmem>>, vector<8x32xf32>
    tpu.vector_store %arg6[%c32_127, %c0_128], %335 {strides = array<i32>} : memref<64x32xf32, #tpu.memory_space<vmem>>, vector<8x32xf32>,
    %c40_129 = arith.constant 40 : index
    %c0_130 = arith.constant 0 : index
    %337 = vector.load %arg7[%c40_129, %c0_130] : memref<64x128xf32, #tpu.memory_space<vmem>>, vector<8x128xf32>
    %338 = arith.truncf %335 : vector<8x32xf32> to vector<8x32xbf16>
    %cst_131 = arith.constant dense<0.000000e+00> : vector<8x128xf32>
    %339 = tpu.matmul %338, %221, %cst_131 {dimension_numbers = #tpu.dot_dimension_numbers<[1], [0], [0], [1], [0, 0, 1, 1], [], []>} : vector<8x32xbf16>, vector<32x128xbf16>, vector<8x128xf32> -> vector<8x128xf32>
    %340 = arith.addf %337, %339 : vector<8x128xf32>
    %341 = vector.extract_strided_slice %340 {offsets = [0, 0], sizes = [8, 96], strides = [1, 1]} : vector<8x128xf32> to vector<8x96xf32>
    %cst_132 = arith.constant 5.000000e-01 : f32
    %342 = vector.broadcast %cst_132 : f32 to vector<8x96xf32>
    %343 = arith.mulf %342, %341 : vector<8x96xf32>
    %344 = math.tanh %343 : vector<8x96xf32>
    %cst_133 = arith.constant 5.000000e-01 : f32
    %345 = vector.broadcast %cst_133 : f32 to vector<8x96xf32>
    %346 = arith.mulf %345, %344 : vector<8x96xf32>
    %cst_134 = arith.constant 5.000000e-01 : f32
    %347 = vector.broadcast %cst_134 : f32 to vector<8x96xf32>
    %348 = arith.addf %346, %347 : vector<8x96xf32>
    %349 = vector.extract_strided_slice %348 {offsets = [0, 0], sizes = [8, 32], strides = [1, 1]} : vector<8x96xf32> to vector<8x32xf32>
    %350 = vector.extract_strided_slice %348 {offsets = [0, 32], sizes = [8, 32], strides = [1, 1]} : vector<8x96xf32> to vector<8x32xf32>
    %351 = vector.extract_strided_slice %348 {offsets = [0, 64], sizes = [8, 32], strides = [1, 1]} : vector<8x96xf32> to vector<8x32xf32>
    %352 = vector.extract_strided_slice %340 {offsets = [0, 96], sizes = [8, 32], strides = [1, 1]} : vector<8x128xf32> to vector<8x32xf32>
    %353 = math.tanh %352 : vector<8x32xf32>
    %354 = arith.mulf %350, %333 : vector<8x32xf32>
    %355 = arith.mulf %349, %353 : vector<8x32xf32>
    %356 = arith.addf %354, %355 : vector<8x32xf32>
    %357 = math.tanh %356 : vector<8x32xf32>
    %358 = arith.mulf %351, %357 : vector<8x32xf32>
    %c40_135 = arith.constant 40 : index
    %c0_136 = arith.constant 0 : index
    %359 = vector.load %arg6[%c40_135, %c0_136] : memref<64x32xf32, #tpu.memory_space<vmem>>, vector<8x32xf32>
    tpu.vector_store %arg6[%c40_135, %c0_136], %358 {strides = array<i32>} : memref<64x32xf32, #tpu.memory_space<vmem>>, vector<8x32xf32>,
    %c48_137 = arith.constant 48 : index
    %c0_138 = arith.constant 0 : index
    %360 = vector.load %arg7[%c48_137, %c0_138] : memref<64x128xf32, #tpu.memory_space<vmem>>, vector<8x128xf32>
    %361 = arith.truncf %358 : vector<8x32xf32> to vector<8x32xbf16>
    %cst_139 = arith.constant dense<0.000000e+00> : vector<8x128xf32>
    %362 = tpu.matmul %361, %221, %cst_139 {dimension_numbers = #tpu.dot_dimension_numbers<[1], [0], [0], [1], [0, 0, 1, 1], [], []>} : vector<8x32xbf16>, vector<32x128xbf16>, vector<8x128xf32> -> vector<8x128xf32>
    %363 = arith.addf %360, %362 : vector<8x128xf32>
    %364 = vector.extract_strided_slice %363 {offsets = [0, 0], sizes = [8, 96], strides = [1, 1]} : vector<8x128xf32> to vector<8x96xf32>
    %cst_140 = arith.constant 5.000000e-01 : f32
    %365 = vector.broadcast %cst_140 : f32 to vector<8x96xf32>
    %366 = arith.mulf %365, %364 : vector<8x96xf32>
    %367 = math.tanh %366 : vector<8x96xf32>
    %cst_141 = arith.constant 5.000000e-01 : f32
    %368 = vector.broadcast %cst_141 : f32 to vector<8x96xf32>
    %369 = arith.mulf %368, %367 : vector<8x96xf32>
    %cst_142 = arith.constant 5.000000e-01 : f32
    %370 = vector.broadcast %cst_142 : f32 to vector<8x96xf32>
    %371 = arith.addf %369, %370 : vector<8x96xf32>
    %372 = vector.extract_strided_slice %371 {offsets = [0, 0], sizes = [8, 32], strides = [1, 1]} : vector<8x96xf32> to vector<8x32xf32>
    %373 = vector.extract_strided_slice %371 {offsets = [0, 32], sizes = [8, 32], strides = [1, 1]} : vector<8x96xf32> to vector<8x32xf32>
    %374 = vector.extract_strided_slice %371 {offsets = [0, 64], sizes = [8, 32], strides = [1, 1]} : vector<8x96xf32> to vector<8x32xf32>
    %375 = vector.extract_strided_slice %363 {offsets = [0, 96], sizes = [8, 32], strides = [1, 1]} : vector<8x128xf32> to vector<8x32xf32>
    %376 = math.tanh %375 : vector<8x32xf32>
    %377 = arith.mulf %373, %356 : vector<8x32xf32>
    %378 = arith.mulf %372, %376 : vector<8x32xf32>
    %379 = arith.addf %377, %378 : vector<8x32xf32>
    %380 = math.tanh %379 : vector<8x32xf32>
    %381 = arith.mulf %374, %380 : vector<8x32xf32>
    %c48_143 = arith.constant 48 : index
    %c0_144 = arith.constant 0 : index
    %382 = vector.load %arg6[%c48_143, %c0_144] : memref<64x32xf32, #tpu.memory_space<vmem>>, vector<8x32xf32>
    tpu.vector_store %arg6[%c48_143, %c0_144], %381 {strides = array<i32>} : memref<64x32xf32, #tpu.memory_space<vmem>>, vector<8x32xf32>,
    %c56_145 = arith.constant 56 : index
    %c0_146 = arith.constant 0 : index
    %383 = vector.load %arg7[%c56_145, %c0_146] : memref<64x128xf32, #tpu.memory_space<vmem>>, vector<8x128xf32>
    %384 = arith.truncf %381 : vector<8x32xf32> to vector<8x32xbf16>
    %cst_147 = arith.constant dense<0.000000e+00> : vector<8x128xf32>
    %385 = tpu.matmul %384, %221, %cst_147 {dimension_numbers = #tpu.dot_dimension_numbers<[1], [0], [0], [1], [0, 0, 1, 1], [], []>} : vector<8x32xbf16>, vector<32x128xbf16>, vector<8x128xf32> -> vector<8x128xf32>
    %386 = arith.addf %383, %385 : vector<8x128xf32>
    %387 = vector.extract_strided_slice %386 {offsets = [0, 0], sizes = [8, 96], strides = [1, 1]} : vector<8x128xf32> to vector<8x96xf32>
    %cst_148 = arith.constant 5.000000e-01 : f32
    %388 = vector.broadcast %cst_148 : f32 to vector<8x96xf32>
    %389 = arith.mulf %388, %387 : vector<8x96xf32>
    %390 = math.tanh %389 : vector<8x96xf32>
    %cst_149 = arith.constant 5.000000e-01 : f32
    %391 = vector.broadcast %cst_149 : f32 to vector<8x96xf32>
    %392 = arith.mulf %391, %390 : vector<8x96xf32>
    %cst_150 = arith.constant 5.000000e-01 : f32
    %393 = vector.broadcast %cst_150 : f32 to vector<8x96xf32>
    %394 = arith.addf %392, %393 : vector<8x96xf32>
    %395 = vector.extract_strided_slice %394 {offsets = [0, 0], sizes = [8, 32], strides = [1, 1]} : vector<8x96xf32> to vector<8x32xf32>
    %396 = vector.extract_strided_slice %394 {offsets = [0, 32], sizes = [8, 32], strides = [1, 1]} : vector<8x96xf32> to vector<8x32xf32>
    %397 = vector.extract_strided_slice %394 {offsets = [0, 64], sizes = [8, 32], strides = [1, 1]} : vector<8x96xf32> to vector<8x32xf32>
    %398 = vector.extract_strided_slice %386 {offsets = [0, 96], sizes = [8, 32], strides = [1, 1]} : vector<8x128xf32> to vector<8x32xf32>
    %399 = math.tanh %398 : vector<8x32xf32>
    %400 = arith.mulf %396, %379 : vector<8x32xf32>
    %401 = arith.mulf %395, %399 : vector<8x32xf32>
    %402 = arith.addf %400, %401 : vector<8x32xf32>
    %403 = math.tanh %402 : vector<8x32xf32>
    %404 = arith.mulf %397, %403 : vector<8x32xf32>
    %c56_151 = arith.constant 56 : index
    %c0_152 = arith.constant 0 : index
    %405 = vector.load %arg6[%c56_151, %c0_152] : memref<64x32xf32, #tpu.memory_space<vmem>>, vector<8x32xf32>
    tpu.vector_store %arg6[%c56_151, %c0_152], %404 {strides = array<i32>} : memref<64x32xf32, #tpu.memory_space<vmem>>, vector<8x32xf32>,
    %c0_153 = arith.constant 0 : index
    %c384 = arith.constant 384 : index
    %406 = vector.load %arg3[%c0_153, %c384] : memref<32x416xbf16, #tpu.memory_space<vmem>>, vector<32x32xbf16>
    %c0_154 = arith.constant 0 : index
    %c128_155 = arith.constant 128 : index
    %407 = vector.load %arg4[%c0_154, %c128_155] : memref<1x160xf32, #tpu.memory_space<vmem>>, vector<1x32xf32>
    %c0_156 = arith.constant 0 : index
    %c0_157 = arith.constant 0 : index
    %408 = vector.load %arg6[%c0_156, %c0_157] : memref<64x32xf32, #tpu.memory_space<vmem>>, vector<64x32xf32>
    %409 = arith.truncf %408 : vector<64x32xf32> to vector<64x32xbf16>
    %cst_158 = arith.constant dense<0.000000e+00> : vector<64x32xf32>
    %410 = tpu.matmul %409, %406, %cst_158 {dimension_numbers = #tpu.dot_dimension_numbers<[1], [0], [0], [1], [0, 0, 1, 1], [], []>} : vector<64x32xbf16>, vector<32x32xbf16>, vector<64x32xf32> -> vector<64x32xf32>
    %411 = vector.broadcast %407 : vector<1x32xf32> to vector<64x32xf32>
    %412 = arith.addf %410, %411 : vector<64x32xf32>
    %413 = vector.extract_strided_slice %412 {offsets = [0, 0], sizes = [8, 32], strides = [1, 1]} : vector<64x32xf32> to vector<8x32xf32>
    %c0_159 = arith.constant 0 : index
    %c0_160 = arith.constant 0 : index
    %414 = vector.load %arg5[%c0_159, %c0_160] : memref<8x256xf32, #tpu.memory_space<vmem>>, vector<8x32xf32>
    tpu.vector_store %arg5[%c0_159, %c0_160], %413 {strides = array<i32>} : memref<8x256xf32, #tpu.memory_space<vmem>>, vector<8x32xf32>,
    %415 = vector.extract_strided_slice %412 {offsets = [8, 0], sizes = [8, 32], strides = [1, 1]} : vector<64x32xf32> to vector<8x32xf32>
    %c0_161 = arith.constant 0 : index
    %c32_162 = arith.constant 32 : index
    %416 = vector.load %arg5[%c0_161, %c32_162] : memref<8x256xf32, #tpu.memory_space<vmem>>, vector<8x32xf32>
    tpu.vector_store %arg5[%c0_161, %c32_162], %415 {strides = array<i32>} : memref<8x256xf32, #tpu.memory_space<vmem>>, vector<8x32xf32>,
    %417 = vector.extract_strided_slice %412 {offsets = [16, 0], sizes = [8, 32], strides = [1, 1]} : vector<64x32xf32> to vector<8x32xf32>
    %c0_163 = arith.constant 0 : index
    %c64 = arith.constant 64 : index
    %418 = vector.load %arg5[%c0_163, %c64] : memref<8x256xf32, #tpu.memory_space<vmem>>, vector<8x32xf32>
    tpu.vector_store %arg5[%c0_163, %c64], %417 {strides = array<i32>} : memref<8x256xf32, #tpu.memory_space<vmem>>, vector<8x32xf32>,
    %419 = vector.extract_strided_slice %412 {offsets = [24, 0], sizes = [8, 32], strides = [1, 1]} : vector<64x32xf32> to vector<8x32xf32>
    %c0_164 = arith.constant 0 : index
    %c96 = arith.constant 96 : index
    %420 = vector.load %arg5[%c0_164, %c96] : memref<8x256xf32, #tpu.memory_space<vmem>>, vector<8x32xf32>
    tpu.vector_store %arg5[%c0_164, %c96], %419 {strides = array<i32>} : memref<8x256xf32, #tpu.memory_space<vmem>>, vector<8x32xf32>,
    %421 = vector.extract_strided_slice %412 {offsets = [32, 0], sizes = [8, 32], strides = [1, 1]} : vector<64x32xf32> to vector<8x32xf32>
    %c0_165 = arith.constant 0 : index
    %c128_166 = arith.constant 128 : index
    %422 = vector.load %arg5[%c0_165, %c128_166] : memref<8x256xf32, #tpu.memory_space<vmem>>, vector<8x32xf32>
    tpu.vector_store %arg5[%c0_165, %c128_166], %421 {strides = array<i32>} : memref<8x256xf32, #tpu.memory_space<vmem>>, vector<8x32xf32>,
    %423 = vector.extract_strided_slice %412 {offsets = [40, 0], sizes = [8, 32], strides = [1, 1]} : vector<64x32xf32> to vector<8x32xf32>
    %c0_167 = arith.constant 0 : index
    %c160 = arith.constant 160 : index
    %424 = vector.load %arg5[%c0_167, %c160] : memref<8x256xf32, #tpu.memory_space<vmem>>, vector<8x32xf32>
    tpu.vector_store %arg5[%c0_167, %c160], %423 {strides = array<i32>} : memref<8x256xf32, #tpu.memory_space<vmem>>, vector<8x32xf32>,
    %425 = vector.extract_strided_slice %412 {offsets = [48, 0], sizes = [8, 32], strides = [1, 1]} : vector<64x32xf32> to vector<8x32xf32>
    %c0_168 = arith.constant 0 : index
    %c192 = arith.constant 192 : index
    %426 = vector.load %arg5[%c0_168, %c192] : memref<8x256xf32, #tpu.memory_space<vmem>>, vector<8x32xf32>
    tpu.vector_store %arg5[%c0_168, %c192], %425 {strides = array<i32>} : memref<8x256xf32, #tpu.memory_space<vmem>>, vector<8x32xf32>,
    %427 = vector.extract_strided_slice %412 {offsets = [56, 0], sizes = [8, 32], strides = [1, 1]} : vector<64x32xf32> to vector<8x32xf32>
    %c0_169 = arith.constant 0 : index
    %c224 = arith.constant 224 : index
    %428 = vector.load %arg5[%c0_169, %c224] : memref<8x256xf32, #tpu.memory_space<vmem>>, vector<8x32xf32>
    tpu.vector_store %arg5[%c0_169, %c224], %427 {strides = array<i32>} : memref<8x256xf32, #tpu.memory_space<vmem>>, vector<8x32xf32>,
    return
  }
}

</mosaic_0001>

<bundles_post_ra>
// kernel: emb2seq_forward.1
= control target key start
LH: loop header
LB: loop body
LE: loop exit
PB: predicated region body
PF: predicated region fallthrough
CT: control target
= control target key end

     0   :  { %10 = vsyncpa [#allocation5], 0  ;;  %s2046_s0 = inlined_call_operand.vmem [shape: f32[8,32], index: 0, kind: input, shape index: {}]   ;;  %s2047_s1 = inlined_call_operand.hbm [shape: bf16[32,1152], index: 1, kind: input, shape index: {}]   ;;  %s2048_s2 = inlined_call_operand.vmem [shape: f32[1,1152], index: 2, kind: input, shape index: {}]   ;;  %s2049_s3 = inlined_call_operand.hbm [shape: bf16[32,416], index: 3, kind: input, shape index: {}]   ;;  %s2050_s4 = inlined_call_operand.vmem [shape: f32[1,160], index: 4, kind: input, shape index: {}]   ;;  %s2051_s5 = inlined_call_operand.vmem [shape: f32[8,256], index: 5, kind: output, shape index: {}]  }
   0x1   :  { %s18_s20 = sshll.u32 %s2047_s1, 4  ;;  %s19_s20 = int_to_ptr.hbm [resolvable:$true] %s18_s20 }
   0x2   :  { %11 = vsyncpa [#allocation7], 0  ;;  %s1657_s21 = smov [#allocation4]   ;;  %s33_s25 = sshll.u32 %s2049_s3, 4  ;;  %s34_s25 = int_to_ptr.hbm [resolvable:$true] %s33_s25 }
   0x3   :  { %s20_s22 = sshll.u32 %s1657_s21, 4  ;;  %s1658_s26 = smov 576   ;;  %s21_s22 = int_to_ptr.vmem [resolvable:$true] %s20_s22 }
   0x4   :  { %s1659_s27 = smov 36   ;;  %s1660_s28 = smov [#allocation6]  }
   0x5   :  { %26 = dma.hbm_to_vmem [thread:$0]  %s19_s20, 2304, %s21_s22, [#allocation5], %s1658_s26, %s1658_s26, %s1659_s27  }
   0x6   :  { %s35_s29 = sshll.u32 %s1660_s28, 4  ;;  %s1661_s30 = smov 256   ;;  %s36_s29 = int_to_ptr.vmem [resolvable:$true] %s35_s29 }
   0x7   :  { %s1662_s6 = smov 16  }
   0x8   :  { %41 = dma.hbm_to_vmem [thread:$0]  %s34_s25, 1024, %s36_s29, [#allocation7], %s1661_s30, %s1661_s30, %s1662_s6  }
   0x9   :  { %1653 = dma.done.wait [#allocation5], 2304  }
   0xa   :  { %1654 = vsyncadd [#allocation5], 4294964992 }
   0xb   :  { %1655 = dma.done.wait [#allocation7], 1024  }
   0xc   :  { %1656 = vsyncadd [#allocation7], 4294966272  ;;  %v1370_v0 = vld [vmem:[#allocation4 + $0x48] sm:$0xf]  ;;  %v1482_v1 = vld [vmem:[#allocation4 + $0x68] sm:$0xf0] }
   0xd   :  { %v1334_v2 = vld [vmem:[#allocation4] sm:$0xf]  ;;  %v1371_v3 = vor.u32 %v1482_v1, %v1370_v0  ;;  %v1473_v4 = vld [vmem:[#allocation4 + $0x20] sm:$0xf0]  ;;  %v1478_v5 = vld [vmem:[#allocation4 + $0x4c] sm:$0xf] }
   0xe   :  { %v1372_v6 = vld [vmem:[#allocation4 + $0x6c] sm:$0xf0]  ;;  %v1469_v7 = vld [vmem:[#allocation4 + $0x4] sm:$0xf]  ;;  %v1336_v8 = vld [vmem:[#allocation4 + $0x24] sm:$0xf0]  ;;  %v1335_v9 = vor.u32 %v1473_v4, %v1334_v2 }
   0xf   :  { %199 = vmatpush.bf16.msra.mxu3 %v1371_v3  ;;  %v53_v10 = vld [vmem:[%s2046_s0] sm:$0xff]  ;;  %v1375_v11 = vor.u32 %v1478_v5, %v1372_v6  ;;  %v1480_v12 = vld [vmem:[#allocation4 + $0x5c] sm:$0xf]  ;;  %v1339_v14 = vor.u32 %v1469_v7, %v1336_v8  ;;  %vm189_vm0 = vcmask 261120   ;;  %v1471_v17 = vld [vmem:[#allocation4 + $0x14] sm:$0xf] }
  0x10   :  { %v1388_v13 = vld [vmem:[#allocation4 + $0x7c] sm:$0xf0]  ;;  %v1705_v15 = vpack.c.bf16 %v53_v10, %v53_v10  ;;  %v1352_v18 = vld [vmem:[#allocation4 + $0x34] sm:$0xf0]  ;;  %v1419_v19 = vld [vmem:[#allocation6 + $0x20] sm:$0xf] }
  0x11   :  { %212 = vmatpush.bf16.msra.mxu1 %v1375_v11  ;;  %v1391_v16 = vor.u32 %v1480_v12, %v1388_v13  ;;  %v1488_v20 = vld [vmem:[#allocation6 + $0x2c] sm:$0xf0]  ;;  %v1355_v21 = vor.u32 %v1471_v17, %v1352_v18  ;;  %v1415_v23 = vld [vmem:[#allocation6] sm:$0xf]  ;;  %s1663_s8 = smov 32   ;;  %s1664_s9 = smov 96  }
  0x12   :  { %v1709_v22 = vor.u32 %v1488_v20, %v1419_v19  ;;  %v1487_v24 = vld [vmem:[#allocation6 + $0xc] sm:$0xf0]  ;;  %v1378_v53 = vld [vmem:[#allocation4 + $0x50] sm:$0xf]  ;;  %v1483_v54 = vld [vmem:[#allocation4 + $0x70] sm:$0xf0] }
  0x13   :  { %200 = vmatpush.bf16.msra.mxu3 %v1335_v9  ;;  %v1714_v25 = vor.u32 %v1487_v24, %v1415_v23  ;;  %v1724_v26 = vld [vmem:[%s2048_s2] sm:$0xff]  ;;  %v1342_v55 = vld [vmem:[#allocation4 + $0x8] sm:$0xf]  ;;  %v1379_v56 = vor.u32 %v1483_v54, %v1378_v53  ;;  %v1474_v57 = vld [vmem:[#allocation4 + $0x28] sm:$0xf0]  ;;  %s1665_s10 = smov 64  }
  0x14   :  { %v79_v28 = vperm.slane %v1724_v26, 0  ;;  %v80_v36 = vperm.slane %v1724_v26, 1  ;;  %v1394_v58 = vld [vmem:[#allocation4 + $0x60] sm:$0xf]  ;;  %v1485_v59 = vld [vmem:[#allocation4 + $0x80] sm:$0xf0]  ;;  %v1343_v60 = vor.u32 %v1474_v57, %v1342_v55 }
  0x15   :  { %213 = vmatpush.bf16.msra.mxu1 %v1339_v14  ;;  %225 = vmatpush.bf16.msra.mxu2 %v1379_v56  ;;  %v1395_v61 = vor.u32 %v1485_v59, %v1394_v58  ;;  %v1358_v62 = vld [vmem:[#allocation4 + $0x18] sm:$0xf]  ;;  %v1476_v63 = vld [vmem:[#allocation4 + $0x38] sm:$0xf0]  ;;  %v81_v9 = vperm.slane %v1724_v26, 2  ;;  %vm1296_vm1 = vcmask 523520  }
  0x16   :  { %1404 = vmatmul.msk.bf16.vlgmr.msra.gmra.mxu3 %vm189_vm0, %v1705_v15  ;;  %v1359_v0 = vor.u32 %v1476_v63, %v1358_v62  ;;  %vm1302_vm2 = vcmask 785920   ;;  %vm1308_vm3 = vcmask 1048320  }
  0x18   :  { %1405 = vmatmul.msk.bf16.vlgmr.msra.gmra.mxu1 %vm189_vm0, %v1705_v15 }
  0x19   :  { %264 = vmatpush.bf16.msrb.mxu1 %v1391_v16  ;;  %226 = vmatpush.bf16.msra.mxu2 %v1343_v60 }
  0x1c   :  { %1406 = vmatmul.msk.bf16.vlgmr.msra.gmra.mxu2 %vm189_vm0, %v1705_v15 }
  0x1d   :  { %265 = vmatpush.bf16.msrb.mxu1 %v1355_v21  ;;  %277 = vmatpush.bf16.msrb.mxu2 %v1395_v61 }
  0x21   :  { %345 = vmatpush.bf16.msra.mxu1 %v1709_v22  ;;  %278 = vmatpush.bf16.msrb.mxu2 %v1359_v0 }
  0x25   :  { %346 = vmatpush.bf16.msra.mxu1 %v1714_v25  ;;  %398 = vmatpush.bf16.msra.mxu2 %v1709_v22 }
  0x28   :  { %1409 = vmatmul.msk.bf16.vlgmr.msrb.gmra.mxu1 %vm189_vm0, %v1705_v15 }
  0x29   :  { %545 = vmatpush.bf16.msrb.mxu1 %v1709_v22  ;;  %399 = vmatpush.bf16.msra.mxu2 %v1714_v25 }
  0x2c   :  { %1410 = vmatmul.msk.bf16.vlgmr.msrb.gmra.mxu2 %vm189_vm0, %v1705_v15 }
  0x2d   :  { %546 = vmatpush.bf16.msrb.mxu1 %v1714_v25  ;;  %594 = vmatpush.bf16.msrb.mxu2 %v1709_v22 }
  0x31   :  { %595 = vmatpush.bf16.msrb.mxu2 %v1714_v25 }
  0x95   :  { %v215_v27 = vpop.f32.mrf.mxu1 }
  0x96   :  { %v216_v37 = vadd.f32 %v215_v27, %v80_v36  ;;  %v1344_v36 = vld [vmem:[#allocation4 + $0x2c] sm:$0xf0] }
  0x99   :  { %v202_v29 = vpop.f32.mrf.mxu3 }
  0x9a   :  { %v1727_v30 = vadd.f32 %v202_v29, %v79_v28  ;;  %v1479_v29 = vld [vmem:[#allocation4 + $0x54] sm:$0xf] }
  0x9c   :  { %v1731_v31 = vpack.c.bf16 %v1727_v30, %v1727_v30 }
  0x9d   :  { %v217_v32 = vpop.f32.mrf.mxu1 }
  0x9e   :  { %1421 = vmatmul.msk.bf16.vlgmr.msra.gmra.mxu1 %vm189_vm0, %v1731_v31  ;;  %v1380_v32 = vld [vmem:[#allocation4 + $0x74] sm:$0xf0] }
  0x9f   :  { %v228_v5 = vpop.f32.mrf.mxu2 }
  0xa0   :  { %v229_v10 = vadd.f32 %v228_v5, %v81_v9  ;;  %v1386_v5 = vld [vmem:[#allocation4 + $0x58] sm:$0xf] }
  0xa1   :  { %v204_v33 = vpop.f32.mrf.mxu3 }
  0xa2   :  { %v1470_v33 = vld [vmem:[#allocation4 + $0xc] sm:$0xf] }
  0xa5   :  { %v1735_v34 = vpop.f32.mrf.mxu1 }
  0xa7   :  { %v230_v6 = vpop.f32.mrf.mxu2 }
  0xa8   :  { %v1484_v6 = vld [vmem:[#allocation4 + $0x78] sm:$0xf0] }
  0xa9   :  { %v1387_v9 = vor.u32 %v1484_v6, %v1386_v5  ;;  %v1435_v5 = vld [vmem:[#allocation6 + $0x28] sm:$0xf]  ;;  %v1490_v6 = vld [vmem:[#allocation6 + $0x34] sm:$0xf0] }
  0xab   :  { %251 = vmatpush.bf16.msra.mxu0 %v1387_v9  ;;  %v1489_v9 = vld [vmem:[#allocation6 + $0x14] sm:$0xf0] }
  0xad   :  { %v269_v35 = vpop.f32.mrf.mxu1 }
  0xae   :  { %v1383_v35 = vor.u32 %v1479_v29, %v1380_v32  ;;  %v83_v29 = vperm.slane %v1724_v26, 4 }
  0xaf   :  { %v1757_v7 = vpop.f32.mrf.mxu2 }
  0xb0   :  { %238 = vmatpush.bf16.msrb.mxu3 %v1383_v35 }
  0xb7   :  { %v282_v8 = vpop.f32.mrf.mxu2 }
  0xb8   :  { %v1350_v8 = vld [vmem:[#allocation4 + $0x10] sm:$0xf] }
 0x11b   :  { %v348_v38 = vpop.f32.mrf.mxu1 }
 0x11c   :  { %v352_v39 = vadd.f32 %v348_v38, %v216_v37  ;;  %v1481_v37 = vld [vmem:[#allocation4 + $0x64] sm:$0xf]  ;;  %v1396_v38 = vld [vmem:[#allocation4 + $0x84] sm:$0xf0] }
 0x11e   :  { %1509 = vtanh.f32 %v352_v39  ;;  %v353_v42 = vmul.f32 0.5, %v352_v39  ;;  %v1347_v39 = vor.u32 %v1470_v33, %v1344_v36 }
 0x120   :  { %1511 = vtanh.f32 %v353_v42  ;;  %v1360_v42 = vld [vmem:[#allocation4 + $0x3c] sm:$0xf0]  ;;  %239 = vmatpush.bf16.msrb.mxu3 %v1347_v39 }
 0x123   :  { %v350_v40 = vpop.f32.mrf.mxu1  ;;  %1407 = vmatmul.msk.bf16.vlgmr.msrb.gmra.mxu3 %vm189_vm0, %v1705_v15 }
 0x124   :  { %v1510_v41 = vpop.eup %1509  ;;  %v1399_v40 = vor.u32 %v1481_v37, %v1396_v38 }
 0x125   :  { %364 = vrot.lane.b32.xlu0 %v1510_v41, %s1663_s8  ;;  %v1472_v41 = vld [vmem:[#allocation4 + $0x1c] sm:$0xf] }
 0x126   :  { %v1512_v43 = vpop.eup %1511  ;;  %290 = vmatpush.bf16.msra.mxu3 %v1399_v40 }
 0x127   :  { %v355_v44 = vmul.f32 0.5, %v1512_v43  ;;  %v1363_v43 = vor.u32 %v1472_v41, %v1360_v42 }
 0x129   :  { %v356_v45 = vadd.f32 0.5, %v355_v44 }
 0x12a   :  { %291 = vmatpush.bf16.msra.mxu3 %v1363_v43 }
 0x12d   :  { %359 = vrot.lane.b32.xlu0 %v1727_v30, %s1664_s9 }
 0x12e   :  { %447 = vmatpush.bf16.msrb.mxu3 %v1709_v22 }
 0x132   :  { %448 = vmatpush.bf16.msrb.mxu3 %v1714_v25 }
 0x133   :  { %1411 = vmatmul.msk.bf16.vlgmr.msra.gmra.mxu3 %vm189_vm0, %v1705_v15 }
 0x136   :  { %643 = vmatpush.bf16.msra.mxu3 %v1709_v22 }
 0x13a   :  { %644 = vmatpush.bf16.msra.mxu3 %v1714_v25 }
 0x197   :  { %v365_v46 = vpop.permute.xlu0 %364 }
 0x198   :  { %v367_v47 = vmul.f32 %v365_v46, %v356_v45 }
 0x19a   :  { %369 = vrot.lane.b32.xlu1 %v367_v47, %s1663_s8 }
 0x19f   :  { %v360_v48 = vpop.permute.xlu0 %359 }
 0x1a0   :  { %v362_v49 = vmul.f32 %v360_v48, %v356_v45 }
 0x1a6   :  { %v241_v48 = vpop.f32.mrf.mxu3 }
 0x20c   :  { %v370_v50 = vpop.permute.xlu1 %369 }
 0x20d   :  { %v372_v51 = vadd.f32 %v370_v50, %v362_v49  ;;  %v243_v49 = vpop.f32.mrf.mxu3 }
 0x20f   :  { %1513 = vtanh.f32 %v372_v51 }
 0x215   :  { %v1514_v52 = vpop.eup %1513  ;;  %v1777_v50 = vpop.f32.mrf.mxu3 }
 0x216   :  { %375 = vrot.lane.b32.xlu1 %v1514_v52, %s1663_s8  ;;  %v82_v52 = vperm.slane %v1724_v26, 3 }
 0x218   :  { %v242_v53 = vadd.f32 %v241_v48, %v82_v52  ;;  %v84_v52 = vperm.slane %v1724_v26, 5 }
 0x288   :  { %v376_v1 = vpop.permute.xlu1 %375 }
 0x289   :  { %v1750_v2 = vmul.f32 %v376_v1, %v356_v45 }
 0x28b   :  { %v385_v3 = vpack.c.bf16 %v1750_v2, %v1750_v2 }
 0x28d   :  { %387 = vrot.lane.b32.xlu2 %v385_v3, %s1665_s10 }
 0x2e7   :  { %v388_v4 = vpop.permute.xlu2 %387 }
 0x2e8   :  { %1422 = vmatmul.msk.bf16.vlgmr.msra.gmra.mxu2 %vm189_vm0, %v388_v4 }
 0x36b   :  { %v401_v11 = vpop.f32.mrf.mxu2 }
 0x36c   :  { %v405_v12 = vadd.f32 %v401_v11, %v229_v10  ;;  %v1475_v10 = vld [vmem:[#allocation4 + $0x30] sm:$0xf0]  ;;  %v1402_v11 = vld [vmem:[#allocation4 + $0x68] sm:$0xf] }
 0x36e   :  { %1515 = vtanh.f32 %v405_v12  ;;  %v406_v16 = vmul.f32 0.5, %v405_v12  ;;  %v1486_v12 = vld [vmem:[#allocation4 + $0x88] sm:$0xf0] }
 0x370   :  { %1517 = vtanh.f32 %v406_v16  ;;  %v1366_v16 = vld [vmem:[#allocation4 + $0x20] sm:$0xf] }
 0x373   :  { %v403_v13 = vpop.f32.mrf.mxu2 }
 0x374   :  { %v1516_v14 = vpop.eup %1515  ;;  %v1351_v13 = vor.u32 %v1475_v10, %v1350_v8  ;;  %v1436_v8 = vor.u32 %v1490_v6, %v1435_v5 }
 0x375   :  { %413 = vrot.lane.b32.xlu2 %v1516_v14, %s1663_s8  ;;  %v1403_v14 = vor.u32 %v1486_v12, %v1402_v11 }
 0x376   :  { %v1518_v17 = vpop.eup %1517  ;;  %252 = vmatpush.bf16.msra.mxu0 %v1351_v13  ;;  %777 = vmatpush.bf16.msra.mxu1 %v1436_v8 }
 0x377   :  { %v408_v18 = vmul.f32 0.5, %v1518_v17  ;;  %v1477_v17 = vld [vmem:[#allocation4 + $0x40] sm:$0xf0] }
 0x379   :  { %v409_v19 = vadd.f32 0.5, %v408_v18  ;;  %v1367_v18 = vor.u32 %v1477_v17, %v1366_v16  ;;  %1408 = vmatmul.msk.bf16.vlgmr.msra.gmra.mxu0 %vm189_vm0, %v1705_v15 }
 0x37a   :  { %303 = vmatpush.bf16.msrb.mxu0 %v1403_v14 }
 0x37b   :  { %v411_v23 = vmul.f32 %v409_v19, %v372_v51  ;;  %v295_v51 = vpop.f32.mrf.mxu3 }
 0x37e   :  { %304 = vmatpush.bf16.msrb.mxu0 %v1367_v18  ;;  %v1447_v18 = vld [vmem:[#allocation6 + $0x24] sm:$0xf] }
 0x382   :  { %496 = vmatpush.bf16.msra.mxu0 %v1709_v22 }
 0x386   :  { %497 = vmatpush.bf16.msra.mxu0 %v1714_v25 }
 0x389   :  { %1412 = vmatmul.msk.bf16.vlgmr.msrb.gmra.mxu0 %vm189_vm0, %v1705_v15 }
 0x38a   :  { %692 = vmatpush.bf16.msrb.mxu0 %v1709_v22 }
 0x38e   :  { %693 = vmatpush.bf16.msrb.mxu0 %v1714_v25 }
 0x3cf   :  { %v414_v20 = vpop.permute.xlu2 %413 }
 0x3d0   :  { %v416_v21 = vmul.f32 %v414_v20, %v409_v19 }
 0x3d2   :  { %418 = vrot.lane.b32.xlu0 %v416_v21, %s1663_s8 }
 0x444   :  { %v419_v24 = vpop.permute.xlu0 %418 }
 0x445   :  { %v421_v27 = vadd.f32 %v419_v24, %v411_v23  ;;  %v254_v23 = vpop.f32.mrf.mxu0 }
 0x446   :  { %v255_v22 = vadd.f32 %v254_v23, %v83_v29  ;;  %v1443_v23 = vld [vmem:[#allocation6 + $0x4] sm:$0xf]  ;;  %v85_v29 = vperm.slane %v1724_v26, 6 }
 0x447   :  { %1519 = vtanh.f32 %v421_v27 }
 0x44d   :  { %v1520_v28 = vpop.eup %1519  ;;  %v256_v24 = vpop.f32.mrf.mxu0 }
 0x44e   :  { %424 = vrot.lane.b32.xlu1 %v1520_v28, %s1663_s8  ;;  %v1491_v24 = vld [vmem:[#allocation6 + $0x10] sm:$0xf0] }
 0x455   :  { %v1797_v28 = vpop.f32.mrf.mxu0 }
 0x45d   :  { %v308_v15 = vpop.f32.mrf.mxu0 }
 0x4c0   :  { %v425_v44 = vpop.permute.xlu1 %424 }
 0x4c1   :  { %v1770_v45 = vmul.f32 %v425_v44, %v409_v19 }
 0x4c3   :  { %v434_v46 = vpack.c.bf16 %v1770_v45, %v1770_v45 }
 0x4c5   :  { %436 = vrot.lane.b32.xlu2 %v434_v46, %s1665_s10 }
 0x51f   :  { %v437_v47 = vpop.permute.xlu2 %436 }
 0x520   :  { %1423 = vmatmul.msk.bf16.vlgmr.msrb.gmra.mxu3 %vm189_vm0, %v437_v47 }
 0x5a3   :  { %v450_v54 = vpop.f32.mrf.mxu3 }
 0x5a4   :  { %v454_v55 = vadd.f32 %v450_v54, %v242_v53  ;;  %v268_v53 = vadd.f32 %v1735_v34, %v84_v52 }
 0x5a6   :  { %1521 = vtanh.f32 %v454_v55  ;;  %v455_v58 = vmul.f32 0.5, %v454_v55 }
 0x5a8   :  { %1523 = vtanh.f32 %v455_v58 }
 0x5ab   :  { %v452_v56 = vpop.f32.mrf.mxu3 }
 0x5ac   :  { %v1522_v57 = vpop.eup %1521 }
 0x5ad   :  { %462 = vrot.lane.b32.xlu0 %v1522_v57, %s1663_s8 }
 0x5ae   :  { %v1524_v59 = vpop.eup %1523 }
 0x5af   :  { %v457_v60 = vmul.f32 0.5, %v1524_v59 }
 0x5b1   :  { %v458_v61 = vadd.f32 0.5, %v457_v60 }
 0x5b3   :  { %v460_v0 = vmul.f32 %v458_v61, %v421_v27 }
 0x61f   :  { %v463_v62 = vpop.permute.xlu0 %462 }
 0x620   :  { %v465_v63 = vmul.f32 %v463_v62, %v458_v61 }
 0x622   :  { %467 = vrot.lane.b32.xlu1 %v465_v63, %s1663_s8 }
 0x694   :  { %v468_v1 = vpop.permute.xlu1 %467 }
 0x695   :  { %v470_v3 = vadd.f32 %v468_v1, %v460_v0 }
 0x697   :  { %1525 = vtanh.f32 %v470_v3 }
 0x69d   :  { %v1526_v4 = vpop.eup %1525 }
 0x69e   :  { %473 = vrot.lane.b32.xlu2 %v1526_v4, %s1663_s8 }
 0x6f8   :  { %v474_v19 = vpop.permute.xlu2 %473 }
 0x6f9   :  { %v1790_v20 = vmul.f32 %v474_v19, %v458_v61  ;;  %v1492_v19 = vld [vmem:[#allocation6 + $0x30] sm:$0xf0] }
 0x6fb   :  { %v483_v21 = vpack.c.bf16 %v1790_v20, %v1790_v20 }
 0x6fd   :  { %485 = vrot.lane.b32.xlu0 %v483_v21, %s1665_s10  ;;  %v1831_v21 = vor.u32 %v1492_v19, %v1447_v18 }
 0x6ff   :  { %837 = vmatpush.bf16.msra.mxu2 %v1831_v21  ;;  %889 = vmatpush.bf16.msrb.mxu3 %v1831_v21 }
 0x76f   :  { %v486_v27 = vpop.permute.xlu0 %485 }
 0x770   :  { %1424 = vmatmul.msk.bf16.vlgmr.msra.gmra.mxu0 %vm189_vm0, %v486_v27  ;;  %v1836_v27 = vor.u32 %v1491_v24, %v1443_v23 }
 0x771   :  { %938 = vmatpush.bf16.msra.mxu0 %v1831_v21 }
 0x772   :  { %838 = vmatpush.bf16.msra.mxu2 %v1836_v27  ;;  %890 = vmatpush.bf16.msrb.mxu3 %v1836_v27 }
 0x775   :  { %939 = vmatpush.bf16.msra.mxu0 %v1836_v27 }
 0x7ed   :  { %v499_v32 = vpop.f32.mrf.mxu0 }
 0x7ee   :  { %v503_v33 = vadd.f32 %v499_v32, %v255_v22  ;;  %v281_v22 = vadd.f32 %v1757_v7, %v85_v29 }
 0x7f0   :  { %1527 = vtanh.f32 %v503_v33  ;;  %v504_v25 = vmul.f32 0.5, %v503_v33 }
 0x7f2   :  { %1529 = vtanh.f32 %v504_v25  ;;  %v1853_v25 = vld [vmem:[%s2050_s4] ss:$0 sm:$0xff] }
 0x7f5   :  { %v501_v35 = vpop.f32.mrf.mxu0 }
 0x7f6   :  { %v1528_v36 = vpop.eup %1527 }
 0x7f7   :  { %511 = vrot.lane.b32.xlu1 %v1528_v36, %s1663_s8 }
 0x7f8   :  { %v1530_v37 = vpop.eup %1529 }
 0x7f9   :  { %v506_v38 = vmul.f32 0.5, %v1530_v37 }
 0x7fb   :  { %v507_v39 = vadd.f32 0.5, %v506_v38 }
 0x7fd   :  { %v509_v42 = vmul.f32 %v507_v39, %v470_v3 }
 0x869   :  { %v512_v40 = vpop.permute.xlu1 %511 }
 0x86a   :  { %v514_v41 = vmul.f32 %v512_v40, %v507_v39 }
 0x86c   :  { %516 = vrot.lane.b32.xlu2 %v514_v41, %s1663_s8 }
 0x8c6   :  { %v517_v43 = vpop.permute.xlu2 %516 }
 0x8c7   :  { %v519_v44 = vadd.f32 %v517_v43, %v509_v42 }
 0x8c9   :  { %1531 = vtanh.f32 %v519_v44 }
 0x8cf   :  { %v1532_v46 = vpop.eup %1531 }
 0x8d0   :  { %522 = vrot.lane.b32.xlu0 %v1532_v46, %s1663_s8 }
 0x942   :  { %v523_v47 = vpop.permute.xlu0 %522 }
 0x943   :  { %v1803_v48 = vmul.f32 %v523_v47, %v507_v39 }
 0x945   :  { %v532_v49 = vpack.c.bf16 %v1803_v48, %v1803_v48 }
 0x947   :  { %534 = vrot.lane.b32.xlu1 %v532_v49, %s1665_s10 }
 0x9b9   :  { %v535_v51 = vpop.permute.xlu1 %534 }
 0x9ba   :  { %1425 = vmatmul.msk.bf16.vlgmr.msrb.gmra.mxu1 %vm189_vm0, %v535_v51 }
 0xa37   :  { %v548_v54 = vpop.f32.mrf.mxu1 }
 0xa38   :  { %v552_v55 = vadd.f32 %v548_v54, %v268_v53 }
 0xa3a   :  { %1533 = vtanh.f32 %v552_v55  ;;  %v553_v58 = vmul.f32 0.5, %v552_v55 }
 0xa3c   :  { %1535 = vtanh.f32 %v553_v58 }
 0xa3f   :  { %v550_v56 = vpop.f32.mrf.mxu1 }
 0xa40   :  { %v1534_v57 = vpop.eup %1533 }
 0xa41   :  { %560 = vrot.lane.b32.xlu2 %v1534_v57, %s1663_s8 }
 0xa42   :  { %v1536_v59 = vpop.eup %1535 }
 0xa43   :  { %v555_v60 = vmul.f32 0.5, %v1536_v59 }
 0xa45   :  { %v556_v61 = vadd.f32 0.5, %v555_v60 }
 0xa47   :  { %v558_v34 = vmul.f32 %v556_v61, %v519_v44 }
 0xa9b   :  { %v561_v62 = vpop.permute.xlu2 %560 }
 0xa9c   :  { %v563_v63 = vmul.f32 %v561_v62, %v556_v61 }
 0xa9e   :  { %565 = vrot.lane.b32.xlu0 %v563_v63, %s1663_s8 }
 0xaa6   :  { %380 = vrot.lane.b32.xlu0 %v1750_v2, %s1665_s10  ;;  %v1431_v2 = vld [vmem:[#allocation6 + $0x8] sm:$0xf] }
 0xaa7   :  { %v1432_v10 = vor.u32 %v1489_v9, %v1431_v2  ;;  %v86_v9 = vperm.slane %v1724_v26, 7 }
 0xaa9   :  { %778 = vmatpush.bf16.msra.mxu1 %v1432_v10  ;;  %v294_v10 = vadd.f32 %v1777_v50, %v86_v9 }
 0xb10   :  { %v566_v0 = vpop.permute.xlu0 %565 }
 0xb11   :  { %v1815_v1 = vadd.f32 %v566_v0, %v558_v34 }
 0xb13   :  { %1537 = vtanh.f32 %v1815_v1 }
 0xb18   :  { %v381_v3 = vpop.permute.xlu0 %380 }
 0xb19   :  { %v1538_v4 = vpop.eup %1537  ;;  %383 = vst.msk [vmem:[#allocation2] sm:$0xff] %vm189_vm0, %v381_v3 }
 0xb1a   :  { %571 = vrot.lane.b32.xlu1 %v1538_v4, %s1663_s8 }
 0xb22   :  { %429 = vrot.lane.b32.xlu1 %v1770_v45, %s1665_s10  ;;  %v732_v45 = vld [vmem:[#allocation2] sm:$0xff] }
 0xb8c   :  { %v572_v11 = vpop.permute.xlu1 %571 }
 0xb8d   :  { %v1822_v12 = vmul.f32 %v572_v11, %v556_v61 }
 0xb8f   :  { %v581_v13 = vpack.c.bf16 %v1822_v12, %v1822_v12 }
 0xb91   :  { %583 = vrot.lane.b32.xlu2 %v581_v13, %s1665_s10 }
 0xb94   :  { %v430_v14 = vpop.permute.xlu1 %429 }
 0xb95   :  { %432 = vst.msk [vmem:[#allocation2 + $0x8] sm:$0xff] %vm189_vm0, %v430_v14 }
 0xb99   :  { %814 = vrot.lane.b32.xlu2 %v1731_v31, %s1664_s9 }
 0xb9c   :  { %v733_v16 = vld [vmem:[#allocation2 + $0x8] sm:$0xff] }
 0xb9d   :  { %v740_v17 = vpack.c.bf16 %v733_v16, %v732_v45 }
 0xb9f   :  { %1437 = vmatmul.msk.bf16.vlgmr.msra.gmra.mxu1 %vm189_vm0, %v740_v17 }
 0xbeb   :  { %v584_v31 = vpop.permute.xlu2 %583 }
 0xbec   :  { %1426 = vmatmul.msk.bf16.vlgmr.msrb.gmra.mxu2 %vm189_vm0, %v584_v31 }
 0xbed   :  { %987 = vmatpush.bf16.msrb.mxu2 %v1831_v21 }
 0xbf1   :  { %988 = vmatpush.bf16.msrb.mxu2 %v1836_v27 }
 0xbf3   :  { %v815_v15 = vpop.permute.xlu2 %814 }
 0xbfc   :  { %1449 = vmatmul.msk.bf16.vlgmr.msra.gmra.mxu2 %vm189_vm0, %v815_v15 }
 0xbfd   :  { %1134 = vmatpush.bf16.msra.mxu2 %v1831_v21 }
 0xc01   :  { %1135 = vmatpush.bf16.msra.mxu2 %v1836_v27 }
 0xc1c   :  { %v780_v37 = vpop.f32.mrf.mxu1 }
 0xc1d   :  { %v781_v38 = vadd.f32 %v1853_v25, %v780_v37 }
 0xc24   :  { %v782_v16 = vpop.f32.mrf.mxu1 }
 0xc25   :  { %v783_v17 = vadd.f32 %v1853_v25, %v782_v16 }
 0xc6f   :  { %v597_v32 = vpop.f32.mrf.mxu2 }
 0xc70   :  { %v601_v33 = vadd.f32 %v597_v32, %v281_v22 }
 0xc72   :  { %1539 = vtanh.f32 %v601_v33  ;;  %v602_v42 = vmul.f32 0.5, %v601_v33 }
 0xc77   :  { %v599_v35 = vpop.f32.mrf.mxu2 }
 0xc78   :  { %v1540_v36 = vpop.eup %1539 }
 0xc79   :  { %609 = vrot.lane.b32.xlu0 %v1540_v36, %s1663_s8 }
 0xc7f   :  { %v840_v39 = vpop.f32.mrf.mxu2 }
 0xc80   :  { %v844_v40 = vadd.f32 %v840_v39, %v781_v38 }
 0xc81   :  { %850 = vrot.lane.b32.xlu0 %v1727_v30, %s1665_s10 }
 0xc82   :  { %1541 = vtanh.f32 %v844_v40  ;;  %v845_v46 = vmul.f32 0.5, %v844_v40 }
 0xc83   :  { %1543 = vtanh.f32 %v602_v42 }
 0xc84   :  { %1545 = vtanh.f32 %v845_v46 }
 0xc87   :  { %v842_v7 = vpop.f32.mrf.mxu2 }
 0xc88   :  { %v1542_v41 = vpop.eup %1541 }
 0xc89   :  { %855 = vrot.lane.b32.xlu1 %v1542_v41, %s1663_s8  ;;  %v1544_v43 = vpop.eup %1543 }
 0xc8a   :  { %v604_v44 = vmul.f32 0.5, %v1544_v43  ;;  %v1546_v52 = vpop.eup %1545 }
 0xc8b   :  { %v847_v53 = vmul.f32 0.5, %v1546_v52 }
 0xc8c   :  { %v605_v47 = vadd.f32 0.5, %v604_v44 }
 0xc8d   :  { %v848_v54 = vadd.f32 0.5, %v847_v53 }
 0xc8e   :  { %v607_v56 = vmul.f32 %v605_v47, %v1815_v1 }
 0xceb   :  { %v610_v49 = vpop.permute.xlu0 %609 }
 0xcec   :  { %v612_v51 = vmul.f32 %v610_v49, %v605_v47 }
 0xcee   :  { %614 = vrot.lane.b32.xlu2 %v612_v51, %s1663_s8 }
 0xcf3   :  { %v851_v60 = vpop.permute.xlu0 %850 }
 0xcf4   :  { %v853_v61 = vmul.f32 %v851_v60, %v848_v54 }
 0xcfb   :  { %v856_v30 = vpop.permute.xlu1 %855 }
 0xcfc   :  { %v858_v55 = vmul.f32 %v856_v30, %v848_v54 }
 0xcfe   :  { %860 = vrot.lane.b32.xlu1 %v858_v55, %s1663_s8 }
 0xd48   :  { %v615_v57 = vpop.permute.xlu2 %614 }
 0xd49   :  { %v617_v58 = vadd.f32 %v615_v57, %v607_v56 }
 0xd4b   :  { %1547 = vtanh.f32 %v617_v58 }
 0xd51   :  { %v1548_v59 = vpop.eup %1547 }
 0xd52   :  { %620 = vrot.lane.b32.xlu2 %v1548_v59, %s1663_s8  ;;  %v1506_v59 = vld [vmem:[%s2048_s2 + $0x8] ss:$0 sm:$0xff] }
 0xd53   :  { %v307_v60 = vadd.f32 %v1506_v59, %v1797_v28 }
 0xd70   :  { %v861_v62 = vpop.permute.xlu1 %860 }
 0xd71   :  { %v863_v63 = vadd.f32 %v861_v62, %v853_v61 }
 0xd73   :  { %1549 = vtanh.f32 %v863_v63 }
 0xd79   :  { %v1550_v34 = vpop.eup %1549 }
 0xd7a   :  { %866 = vrot.lane.b32.xlu0 %v1550_v34, %s1663_s8 }
 0xdac   :  { %v621_v0 = vpop.permute.xlu2 %620 }
 0xdad   :  { %v1864_v3 = vmul.f32 %v621_v0, %v605_v47 }
 0xdaf   :  { %v630_v1 = vpack.c.bf16 %v1864_v3, %v1864_v3 }
 0xdb1   :  { %632 = vrot.lane.b32.xlu1 %v630_v1, %s1665_s10 }
 0xdec   :  { %v867_v4 = vpop.permute.xlu0 %866 }
 0xded   :  { %v1869_v5 = vmul.f32 %v867_v4, %v848_v54 }
 0xdef   :  { %v876_v6 = vpack.c.bf16 %v1869_v5, %v1869_v5 }
 0xdf1   :  { %878 = vrot.lane.b32.xlu2 %v876_v6, %s1665_s10 }
 0xe23   :  { %v633_v8 = vpop.permute.xlu1 %632 }
 0xe24   :  { %1427 = vmatmul.msk.bf16.vlgmr.msra.gmra.mxu3 %vm189_vm0, %v633_v8 }
 0xe25   :  { %1036 = vmatpush.bf16.msra.mxu3 %v1831_v21 }
 0xe29   :  { %1037 = vmatpush.bf16.msra.mxu3 %v1836_v27 }
 0xe4b   :  { %v879_v2 = vpop.permute.xlu2 %878 }
 0xe4c   :  { %1450 = vmatmul.msk.bf16.vlgmr.msrb.gmra.mxu3 %vm189_vm0, %v879_v2 }
 0xe4d   :  { %1183 = vmatpush.bf16.msrb.mxu3 %v1831_v21 }
 0xe51   :  { %1184 = vmatpush.bf16.msrb.mxu3 %v1836_v27 }
 0xea7   :  { %v646_v11 = vpop.f32.mrf.mxu3 }
 0xea8   :  { %v650_v13 = vadd.f32 %v646_v11, %v294_v10 }
 0xeaa   :  { %1551 = vtanh.f32 %v650_v13  ;;  %v651_v26 = vmul.f32 0.5, %v650_v13 }
 0xeaf   :  { %v648_v14 = vpop.f32.mrf.mxu3 }
 0xeb0   :  { %v1552_v45 = vpop.eup %1551 }
 0xeb1   :  { %658 = vrot.lane.b32.xlu0 %v1552_v45, %s1663_s8 }
 0xecf   :  { %v892_v18 = vpop.f32.mrf.mxu3 }
 0xed0   :  { %v896_v19 = vadd.f32 %v892_v18, %v783_v17 }
 0xed2   :  { %1553 = vtanh.f32 %v896_v19  ;;  %v897_v32 = vmul.f32 0.5, %v896_v19 }
 0xed3   :  { %1555 = vtanh.f32 %v651_v26 }
 0xed4   :  { %1557 = vtanh.f32 %v897_v32 }
 0xed7   :  { %v894_v23 = vpop.f32.mrf.mxu3 }
 0xed8   :  { %v1554_v24 = vpop.eup %1553 }
 0xed9   :  { %904 = vrot.lane.b32.xlu1 %v1554_v24, %s1663_s8  ;;  %v1556_v50 = vpop.eup %1555 }
 0xeda   :  { %v653_v31 = vmul.f32 0.5, %v1556_v50  ;;  %v1558_v33 = vpop.eup %1557 }
 0xedb   :  { %v899_v35 = vmul.f32 0.5, %v1558_v33 }
 0xedc   :  { %v654_v15 = vadd.f32 0.5, %v653_v31 }
 0xedd   :  { %v900_v36 = vadd.f32 0.5, %v899_v35 }
 0xede   :  { %v656_v39 = vmul.f32 %v654_v15, %v617_v58 }
 0xedf   :  { %v902_v42 = vmul.f32 %v900_v36, %v863_v63 }
 0xf23   :  { %v659_v29 = vpop.permute.xlu0 %658 }
 0xf24   :  { %v661_v22 = vmul.f32 %v659_v29, %v654_v15 }
 0xf26   :  { %663 = vrot.lane.b32.xlu2 %v661_v22, %s1663_s8 }
 0xf4b   :  { %v905_v37 = vpop.permute.xlu1 %904 }
 0xf4c   :  { %v907_v38 = vmul.f32 %v905_v37, %v900_v36 }
 0xf4e   :  { %909 = vrot.lane.b32.xlu0 %v907_v38, %s1663_s8 }
 0xf80   :  { %v664_v40 = vpop.permute.xlu2 %663 }
 0xf81   :  { %v1887_v7 = vadd.f32 %v664_v40, %v656_v39 }
 0xf83   :  { %1559 = vtanh.f32 %v1887_v7 }
 0xf89   :  { %v1560_v41 = vpop.eup %1559 }
 0xf8a   :  { %669 = vrot.lane.b32.xlu1 %v1560_v41, %s1663_s8 }
 0xf92   :  { %478 = vrot.lane.b32.xlu1 %v1790_v20, %s1665_s10 }
 0xfc0   :  { %v910_v43 = vpop.permute.xlu0 %909 }
 0xfc1   :  { %v912_v44 = vadd.f32 %v910_v43, %v902_v42 }
 0xfc3   :  { %1561 = vtanh.f32 %v912_v44 }
 0xfc9   :  { %v1562_v46 = vpop.eup %1561 }
 0xfca   :  { %915 = vrot.lane.b32.xlu2 %v1562_v46, %s1663_s8 }
 0xfd2   :  { %527 = vrot.lane.b32.xlu2 %v1803_v48, %s1665_s10 }
 0xffc   :  { %v670_v47 = vpop.permute.xlu1 %669 }
 0xffd   :  { %v1896_v49 = vmul.f32 %v670_v47, %v654_v15 }
 0xfff   :  { %v679_v51 = vpack.c.bf16 %v1896_v49, %v1896_v49 }
0x1001   :  { %681 = vrot.lane.b32.xlu0 %v679_v51, %s1665_s10 }
0x1004   :  { %v479_v52 = vpop.permute.xlu1 %478 }
0x1005   :  { %481 = vst.msk [vmem:[#allocation2 + $0x10] sm:$0xff] %vm189_vm0, %v479_v52 }
0x100c   :  { %v734_v30 = vld [vmem:[#allocation2 + $0x10] sm:$0xff] }
0x1024   :  { %v916_v20 = vpop.permute.xlu2 %915 }
0x1025   :  { %v1902_v53 = vmul.f32 %v916_v20, %v900_v36 }
0x1027   :  { %v925_v54 = vpack.c.bf16 %v1902_v53, %v1902_v53 }
0x1029   :  { %927 = vrot.lane.b32.xlu0 %v925_v54, %s1665_s10 }
0x102c   :  { %v528_v48 = vpop.permute.xlu2 %527 }
0x102d   :  { %530 = vst.msk [vmem:[#allocation2 + $0x18] sm:$0xff] %vm189_vm0, %v528_v48 }
0x1034   :  { %v735_v55 = vld [vmem:[#allocation2 + $0x18] sm:$0xff] }
0x1035   :  { %v741_v56 = vpack.c.bf16 %v735_v55, %v734_v30 }
0x1037   :  { %1438 = vmatmul.msk.bf16.gmra.mxu1 %vm189_vm0, %v741_v56 }
0x1073   :  { %v682_v57 = vpop.permute.xlu0 %681 }
0x1074   :  { %1428 = vmatmul.msk.bf16.vlgmr.msrb.gmra.mxu0 %vm189_vm0, %v682_v57 }
0x1075   :  { %1085 = vmatpush.bf16.msrb.mxu0 %v1831_v21 }
0x1079   :  { %1086 = vmatpush.bf16.msrb.mxu0 %v1836_v27 }
0x109b   :  { %v928_v58 = vpop.permute.xlu0 %927 }
0x109c   :  { %1451 = vmatmul.msk.bf16.vlgmr.msra.gmra.mxu0 %vm189_vm0, %v928_v58 }
0x10b4   :  { %v785_v34 = vpop.f32.mrf.mxu1 }
0x10b5   :  { %v786_v0 = vadd.f32 %v1853_v25, %v785_v34 }
0x10bc   :  { %v787_v23 = vpop.f32.mrf.mxu1 }
0x10bd   :  { %v788_v24 = vadd.f32 %v1853_v25, %v787_v23 }
0x10f1   :  { %v695_v61 = vpop.f32.mrf.mxu0 }
0x10f2   :  { %v1917_v62 = vadd.f32 %v695_v61, %v307_v60 }
0x10f9   :  { %v697_v63 = vpop.f32.mrf.mxu0 }
0x1119   :  { %v941_v1 = vpop.f32.mrf.mxu0 }
0x111a   :  { %v945_v21 = vadd.f32 %v941_v1, %v786_v0 }
0x111c   :  { %1563 = vtanh.f32 %v945_v21  ;;  %v946_v6 = vmul.f32 0.5, %v945_v21 }
0x111e   :  { %1565 = vtanh.f32 %v946_v6 }
0x1121   :  { %v943_v27 = vpop.f32.mrf.mxu0 }
0x1122   :  { %v1564_v4 = vpop.eup %1563  ;;  %v700_v27 = vmul.f32 0.5, %v1917_v62 }
0x1123   :  { %953 = vrot.lane.b32.xlu1 %v1564_v4, %s1663_s8 }
0x1124   :  { %v1566_v8 = vpop.eup %1565 }
0x1125   :  { %v948_v2 = vmul.f32 0.5, %v1566_v8 }
0x1127   :  { %v949_v9 = vadd.f32 0.5, %v948_v2 }
0x1129   :  { %v951_v11 = vmul.f32 %v949_v9, %v912_v44 }
0x1195   :  { %v954_v28 = vpop.permute.xlu1 %953 }
0x1196   :  { %v956_v10 = vmul.f32 %v954_v28, %v949_v9 }
0x1198   :  { %958 = vrot.lane.b32.xlu2 %v956_v10, %s1663_s8 }
0x11f2   :  { %v959_v13 = vpop.permute.xlu2 %958 }
0x11f3   :  { %v961_v14 = vadd.f32 %v959_v13, %v951_v11 }
0x11f5   :  { %1567 = vtanh.f32 %v961_v14 }
0x11fb   :  { %v1568_v45 = vpop.eup %1567 }
0x11fc   :  { %964 = vrot.lane.b32.xlu0 %v1568_v45, %s1663_s8 }
0x126e   :  { %v965_v16 = vpop.permute.xlu0 %964 }
0x126f   :  { %v1923_v17 = vmul.f32 %v965_v16, %v949_v9 }
0x1271   :  { %v974_v18 = vpack.c.bf16 %v1923_v17, %v1923_v17 }
0x1273   :  { %976 = vrot.lane.b32.xlu1 %v974_v18, %s1665_s10 }
0x12e5   :  { %v977_v19 = vpop.permute.xlu1 %976 }
0x12e6   :  { %1452 = vmatmul.msk.bf16.vlgmr.msrb.gmra.mxu2 %vm189_vm0, %v977_v19 }
0x1369   :  { %v990_v26 = vpop.f32.mrf.mxu2 }
0x136a   :  { %v994_v50 = vadd.f32 %v990_v26, %v788_v24 }
0x136c   :  { %1569 = vtanh.f32 %v994_v50  ;;  %v995_v29 = vmul.f32 0.5, %v994_v50 }
0x136e   :  { %1571 = vtanh.f32 %v995_v29 }
0x1371   :  { %v992_v31 = vpop.f32.mrf.mxu2 }
0x1372   :  { %v1570_v15 = vpop.eup %1569 }
0x1373   :  { %1002 = vrot.lane.b32.xlu2 %v1570_v15, %s1663_s8 }
0x1374   :  { %v1572_v22 = vpop.eup %1571 }
0x1375   :  { %v997_v32 = vmul.f32 0.5, %v1572_v22 }
0x1377   :  { %v998_v33 = vadd.f32 0.5, %v997_v32 }
0x1379   :  { %v1000_v38 = vmul.f32 %v998_v33, %v961_v14 }
0x137b   :  { %576 = vrot.lane.b32.xlu2 %v1822_v12, %s1665_s10 }
0x13cd   :  { %v1003_v35 = vpop.permute.xlu2 %1002 }
0x13ce   :  { %v1005_v36 = vmul.f32 %v1003_v35, %v998_v33 }
0x13d0   :  { %1007 = vrot.lane.b32.xlu0 %v1005_v36, %s1663_s8 }
0x13d5   :  { %v577_v37 = vpop.permute.xlu2 %576 }
0x13d6   :  { %579 = vst.msk [vmem:[#allocation2 + $0x20] sm:$0xff] %vm189_vm0, %v577_v37 }
0x13d8   :  { %625 = vrot.lane.b32.xlu0 %v1864_v3, %s1665_s10 }
0x13dd   :  { %v736_v42 = vld [vmem:[#allocation2 + $0x20] sm:$0xff] }
0x1442   :  { %v1008_v39 = vpop.permute.xlu0 %1007 }
0x1443   :  { %v1010_v40 = vadd.f32 %v1008_v39, %v1000_v38 }
0x1445   :  { %1573 = vtanh.f32 %v1010_v40 }
0x144a   :  { %v626_v12 = vpop.permute.xlu0 %625 }
0x144b   :  { %v1574_v41 = vpop.eup %1573  ;;  %628 = vst.msk [vmem:[#allocation2 + $0x28] sm:$0xff] %vm189_vm0, %v626_v12 }
0x144c   :  { %1013 = vrot.lane.b32.xlu1 %v1574_v41, %s1663_s8 }
0x1452   :  { %v737_v43 = vld [vmem:[#allocation2 + $0x28] sm:$0xff] }
0x1453   :  { %v742_v44 = vpack.c.bf16 %v737_v43, %v736_v42 }
0x1455   :  { %1439 = vmatmul.msk.bf16.gmra.mxu1 %vm189_vm0, %v742_v44 }
0x14be   :  { %v1014_v46 = vpop.permute.xlu1 %1013 }
0x14bf   :  { %v1940_v47 = vmul.f32 %v1014_v46, %v998_v33 }
0x14c1   :  { %v1023_v3 = vpack.c.bf16 %v1940_v47, %v1940_v47 }
0x14c3   :  { %1025 = vrot.lane.b32.xlu1 %v1023_v3, %s1665_s10 }
0x14d2   :  { %v790_v52 = vpop.f32.mrf.mxu1 }
0x14d3   :  { %v791_v20 = vadd.f32 %v1853_v25, %v790_v52 }
0x1535   :  { %v1026_v51 = vpop.permute.xlu1 %1025 }
0x1536   :  { %1453 = vmatmul.msk.bf16.vlgmr.msra.gmra.mxu3 %vm189_vm0, %v1026_v51 }
0x15b9   :  { %v1039_v54 = vpop.f32.mrf.mxu3 }
0x15ba   :  { %v1043_v48 = vadd.f32 %v1039_v54, %v791_v20 }
0x15bc   :  { %1575 = vtanh.f32 %v1043_v48  ;;  %v1044_v56 = vmul.f32 0.5, %v1043_v48 }
0x15be   :  { %1577 = vtanh.f32 %v1044_v56 }
0x15bf   :  { %1579 = vtanh.f32 %v1917_v62  ;;  %v792_v62 = vpop.f32.mrf.mxu1 }
0x15c0   :  { %v793_v14 = vadd.f32 %v1853_v25, %v792_v62 }
0x15c1   :  { %v1041_v30 = vpop.f32.mrf.mxu3 }
0x15c2   :  { %v1576_v55 = vpop.eup %1575 }
0x15c3   :  { %1051 = vrot.lane.b32.xlu2 %v1576_v55, %s1663_s8 }
0x15c4   :  { %v1578_v57 = vpop.eup %1577 }
0x15c5   :  { %v1046_v58 = vmul.f32 0.5, %v1578_v57  ;;  %v1580_v63 = vpop.eup %1579 }
0x15c7   :  { %v1047_v59 = vadd.f32 0.5, %v1046_v58 }
0x15c9   :  { %v1049_v34 = vmul.f32 %v1047_v59, %v1010_v40 }
0x161d   :  { %v1052_v60 = vpop.permute.xlu2 %1051 }
0x161e   :  { %v1054_v61 = vmul.f32 %v1052_v60, %v1047_v59 }
0x1620   :  { %1056 = vrot.lane.b32.xlu0 %v1054_v61, %s1663_s8 }
0x1628   :  { %707 = vrot.lane.b32.xlu0 %v1580_v63, %s1663_s8 }
0x1692   :  { %v1057_v0 = vpop.permute.xlu0 %1056 }
0x1693   :  { %v1059_v1 = vadd.f32 %v1057_v0, %v1049_v34 }
0x1695   :  { %1581 = vtanh.f32 %v1059_v1 }
0x1696   :  { %1583 = vtanh.f32 %v700_v27 }
0x169a   :  { %v708_v28 = vpop.permute.xlu0 %707 }
0x169b   :  { %v1582_v21 = vpop.eup %1581 }
0x169c   :  { %1062 = vrot.lane.b32.xlu1 %v1582_v21, %s1663_s8  ;;  %v1584_v8 = vpop.eup %1583 }
0x169d   :  { %v702_v9 = vmul.f32 0.5, %v1584_v8 }
0x169f   :  { %v703_v10 = vadd.f32 0.5, %v702_v9 }
0x16a1   :  { %v710_v11 = vmul.f32 %v708_v28, %v703_v10  ;;  %v705_v19 = vmul.f32 %v703_v10, %v1887_v7 }
0x170e   :  { %v1063_v4 = vpop.permute.xlu1 %1062 }
0x170f   :  { %v1953_v6 = vmul.f32 %v1063_v4, %v1047_v59 }
0x1711   :  { %v1072_v2 = vpack.c.bf16 %v1953_v6, %v1953_v6 }
0x1713   :  { %1074 = vrot.lane.b32.xlu2 %v1072_v2, %s1665_s10 }
0x171b   :  { %712 = vrot.lane.b32.xlu2 %v710_v11, %s1663_s8 }
0x176d   :  { %v1075_v13 = vpop.permute.xlu2 %1074 }
0x176e   :  { %1454 = vmatmul.msk.bf16.vlgmr.msrb.gmra.mxu0 %vm189_vm0, %v1075_v13 }
0x1775   :  { %v713_v18 = vpop.permute.xlu2 %712 }
0x1776   :  { %v715_v23 = vadd.f32 %v713_v18, %v705_v19  ;;  %v1494_v19 = vld [vmem:[#allocation6 + $0x38] sm:$0xf0] }
0x17eb   :  { %v1088_v45 = vpop.f32.mrf.mxu0 }
0x17ec   :  { %v1092_v16 = vadd.f32 %v1088_v45, %v793_v14 }
0x17ee   :  { %1585 = vtanh.f32 %v1092_v16  ;;  %v1093_v31 = vmul.f32 0.5, %v1092_v16 }
0x17ef   :  { %1587 = vtanh.f32 %v715_v23  ;;  %v1459_v23 = vld [vmem:[#allocation6 + $0xc] sm:$0xf] }
0x17f0   :  { %1589 = vtanh.f32 %v1093_v31 }
0x17f3   :  { %v1090_v24 = vpop.f32.mrf.mxu0 }
0x17f4   :  { %v1586_v26 = vpop.eup %1585 }
0x17f5   :  { %1100 = vrot.lane.b32.xlu1 %v1586_v26, %s1663_s8  ;;  %v1588_v50 = vpop.eup %1587  ;;  %v1493_v26 = vld [vmem:[#allocation6 + $0x18] sm:$0xf0] }
0x17f6   :  { %v1590_v15 = vpop.eup %1589 }
0x17f7   :  { %v1095_v29 = vmul.f32 0.5, %v1590_v15 }
0x17f9   :  { %v1096_v22 = vadd.f32 0.5, %v1095_v29 }
0x17fb   :  { %v1098_v36 = vmul.f32 %v1096_v22, %v1059_v1 }
0x17fd   :  { %718 = vrot.lane.b32.xlu1 %v1588_v50, %s1663_s8  ;;  %v1460_v50 = vor.u32 %v1493_v26, %v1459_v23 }
0x1867   :  { %v1101_v32 = vpop.permute.xlu1 %1100 }
0x1868   :  { %v1103_v33 = vmul.f32 %v1101_v32, %v1096_v22 }
0x186a   :  { %1105 = vrot.lane.b32.xlu0 %v1103_v33, %s1663_s8 }
0x186f   :  { %v719_v35 = vpop.permute.xlu1 %718 }
0x1870   :  { %v721_v7 = vmul.f32 %v719_v35, %v703_v10 }
0x1872   :  { %723 = vrot.lane.b32.xlu1 %v721_v7, %s1665_s10  ;;  %674 = vrot.lane.b32.xlu0 %v1896_v49, %s1665_s10 }
0x18dc   :  { %v1106_v37 = vpop.permute.xlu0 %1105 }
0x18dd   :  { %v1108_v38 = vadd.f32 %v1106_v37, %v1098_v36 }
0x18df   :  { %1591 = vtanh.f32 %v1108_v38 }
0x18e4   :  { %v724_v39 = vpop.permute.xlu1 %723  ;;  %v675_v40 = vpop.permute.xlu0 %674 }
0x18e5   :  { %v1592_v12 = vpop.eup %1591  ;;  %726 = vst.msk [vmem:[#allocation2 + $0x38] sm:$0xff] %vm189_vm0, %v724_v39 }
0x18e6   :  { %677 = vst.msk [vmem:[#allocation2 + $0x30] sm:$0xff] %vm189_vm0, %v675_v40  ;;  %1111 = vrot.lane.b32.xlu2 %v1592_v12, %s1663_s8 }
0x18ec   :  { %v739_v41 = vld [vmem:[#allocation2 + $0x38] sm:$0xff] }
0x18ed   :  { %v738_v42 = vld [vmem:[#allocation2 + $0x30] sm:$0xff] }
0x18ee   :  { %v743_v43 = vpack.c.bf16 %v739_v41, %v738_v42 }
0x18f0   :  { %1440 = vmatmul.msk.bf16.gmra.mxu1 %vm189_vm0, %v743_v43 }
0x1940   :  { %v1112_v44 = vpop.permute.xlu2 %1111 }
0x1941   :  { %v1114_v49 = vmul.f32 %v1112_v44, %v1096_v22 }
0x1943   :  { %v1121_v46 = vpack.c.bf16 %v1114_v49, %v1114_v49 }
0x1945   :  { %1123 = vrot.lane.b32.xlu2 %v1121_v46, %s1665_s10 }
0x196d   :  { %v795_v51 = vpop.f32.mrf.mxu1 }
0x196e   :  { %v796_v52 = vadd.f32 %v1853_v25, %v795_v51 }
0x1975   :  { %v797_v8 = vpop.f32.mrf.mxu1 }
0x1976   :  { %v798_v2 = vadd.f32 %v1853_v25, %v797_v8 }
0x199f   :  { %v1124_v3 = vpop.permute.xlu2 %1123 }
0x19a0   :  { %1455 = vmatmul.msk.bf16.vlgmr.msra.gmra.mxu2 %vm189_vm0, %v1124_v3 }
0x1a23   :  { %v1137_v20 = vpop.f32.mrf.mxu2 }
0x1a24   :  { %v1141_v54 = vadd.f32 %v1137_v20, %v796_v52 }
0x1a26   :  { %1593 = vtanh.f32 %v1141_v54  ;;  %v1142_v55 = vmul.f32 0.5, %v1141_v54 }
0x1a28   :  { %1595 = vtanh.f32 %v1142_v55 }
0x1a2b   :  { %v1139_v48 = vpop.f32.mrf.mxu2 }
0x1a2c   :  { %v1594_v30 = vpop.eup %1593 }
0x1a2d   :  { %1149 = vrot.lane.b32.xlu0 %v1594_v30, %s1663_s8 }
0x1a2e   :  { %v1596_v56 = vpop.eup %1595 }
0x1a2f   :  { %v1144_v57 = vmul.f32 0.5, %v1596_v56 }
0x1a31   :  { %v1145_v58 = vadd.f32 0.5, %v1144_v57 }
0x1a33   :  { %v1147_v61 = vmul.f32 %v1145_v58, %v1108_v38 }
0x1a9f   :  { %v1150_v59 = vpop.permute.xlu0 %1149 }
0x1aa0   :  { %v1152_v60 = vmul.f32 %v1150_v59, %v1145_v58 }
0x1aa2   :  { %1154 = vrot.lane.b32.xlu1 %v1152_v60, %s1663_s8 }
0x1b14   :  { %v1155_v63 = vpop.permute.xlu1 %1154 }
0x1b15   :  { %v1157_v34 = vadd.f32 %v1155_v63, %v1147_v61 }
0x1b17   :  { %1597 = vtanh.f32 %v1157_v34 }
0x1b1d   :  { %v1598_v0 = vpop.eup %1597 }
0x1b1e   :  { %1160 = vrot.lane.b32.xlu2 %v1598_v0, %s1663_s8 }
0x1b78   :  { %v1161_v1 = vpop.permute.xlu2 %1160 }
0x1b79   :  { %v1163_v21 = vmul.f32 %v1161_v1, %v1145_v58 }
0x1b7b   :  { %v1170_v27 = vpack.c.bf16 %v1163_v21, %v1163_v21 }
0x1b7d   :  { %1172 = vrot.lane.b32.xlu0 %v1170_v27, %s1665_s10 }
0x1bef   :  { %v1173_v4 = vpop.permute.xlu0 %1172 }
0x1bf0   :  { %1456 = vmatmul.msk.bf16.vlgmr.msrb.gmra.mxu3 %vm189_vm0, %v1173_v4 }
0x1c73   :  { %v1186_v9 = vpop.f32.mrf.mxu3 }
0x1c74   :  { %v1190_v28 = vadd.f32 %v1186_v9, %v798_v2 }
0x1c76   :  { %1599 = vtanh.f32 %v1190_v28  ;;  %v1191_v13 = vmul.f32 0.5, %v1190_v28 }
0x1c78   :  { %1601 = vtanh.f32 %v1191_v13 }
0x1c7b   :  { %v1188_v10 = vpop.f32.mrf.mxu3 }
0x1c7c   :  { %v1600_v11 = vpop.eup %1599 }
0x1c7d   :  { %1198 = vrot.lane.b32.xlu1 %v1600_v11, %s1663_s8 }
0x1c7e   :  { %v1602_v62 = vpop.eup %1601 }
0x1c7f   :  { %v1193_v25 = vmul.f32 0.5, %v1602_v62 }
0x1c81   :  { %v1194_v14 = vadd.f32 0.5, %v1193_v25 }
0x1c83   :  { %v1196_v31 = vmul.f32 %v1194_v14, %v1157_v34 }
0x1c85   :  { %1067 = vrot.lane.b32.xlu1 %v1953_v6, %s1665_s10 }
0x1c8d   :  { %920 = vrot.lane.b32.xlu1 %v1902_v53, %s1665_s10 }
0x1c95   :  { %969 = vrot.lane.b32.xlu1 %v1923_v17, %s1665_s10  ;;  %v1463_v17 = vld [vmem:[#allocation6 + $0x2c] sm:$0xf] }
0x1c96   :  { %v1464_v24 = vor.u32 %v1494_v19, %v1463_v17 }
0x1c98   :  { %1495 = vmatpush.bf16.msrb.mxu2 %v1464_v24  ;;  %1268 = vmatpush.bf16.msra.mxu0 %v1464_v24 }
0x1c9c   :  { %1496 = vmatpush.bf16.msrb.mxu2 %v1460_v50  ;;  %1269 = vmatpush.bf16.msra.mxu0 %v1460_v50 }
0x1cef   :  { %v1199_v45 = vpop.permute.xlu1 %1198 }
0x1cf0   :  { %v1201_v16 = vmul.f32 %v1199_v45, %v1194_v14 }
0x1cf2   :  { %1203 = vrot.lane.b32.xlu2 %v1201_v16, %s1663_s8 }
0x1cf7   :  { %v1068_v18 = vpop.permute.xlu1 %1067 }
0x1cf8   :  { %1070 = vst.msk [vmem:[#allocation2 + $0x20] sm:$0xff] %vm189_vm0, %v1068_v18 }
0x1cfa   :  { %1116 = vrot.lane.b32.xlu2 %v1114_v49, %s1665_s10 }
0x1cff   :  { %v921_v6 = vpop.permute.xlu1 %920  ;;  %v1227_v33 = vld [vmem:[#allocation2 + $0x20] sm:$0xff] }
0x1d00   :  { %923 = vst.msk [vmem:[#allocation2 + $0x8] sm:$0xff] %vm189_vm0, %v921_v6 }
0x1d02   :  { %1165 = vrot.lane.b32.xlu2 %v1163_v21, %s1665_s10 }
0x1d07   :  { %v970_v53 = vpop.permute.xlu1 %969  ;;  %v1224_v12 = vld [vmem:[#allocation2 + $0x8] sm:$0xff] }
0x1d08   :  { %972 = vst.msk [vmem:[#allocation2 + $0x10] sm:$0xff] %vm189_vm0, %v970_v53 }
0x1d0a   :  { %1018 = vrot.lane.b32.xlu2 %v1940_v47, %s1665_s10 }
0x1d0f   :  { %v1225_v49 = vld [vmem:[#allocation2 + $0x10] sm:$0xff] }
0x1d4c   :  { %v1204_v15 = vpop.permute.xlu2 %1203 }
0x1d4d   :  { %v1206_v29 = vadd.f32 %v1204_v15, %v1196_v31 }
0x1d4f   :  { %1603 = vtanh.f32 %v1206_v29 }
0x1d54   :  { %v1117_v22 = vpop.permute.xlu2 %1116 }
0x1d55   :  { %v1604_v32 = vpop.eup %1603  ;;  %1119 = vst.msk [vmem:[#allocation2 + $0x28] sm:$0xff] %vm189_vm0, %v1117_v22 }
0x1d56   :  { %1209 = vrot.lane.b32.xlu0 %v1604_v32, %s1663_s8 }
0x1d5c   :  { %v1166_v47 = vpop.permute.xlu2 %1165  ;;  %v1228_v35 = vld [vmem:[#allocation2 + $0x28] sm:$0xff] }
0x1d5d   :  { %1168 = vst.msk [vmem:[#allocation2 + $0x30] sm:$0xff] %vm189_vm0, %v1166_v47  ;;  %v1233_v7 = vpack.c.bf16 %v1228_v35, %v1227_v33 }
0x1d5e   :  { %871 = vrot.lane.b32.xlu0 %v1869_v5, %s1665_s10  ;;  %v1508_v5 = vld [vmem:[%s2050_s4 + $0x1] ss:$0 sm:$0xff] }
0x1d5f   :  { %1467 = vmatmul.msk.bf16.vlgmr.msrb.gmra.mxu2 %vm189_vm0, %v1233_v7 }
0x1d64   :  { %v1019_v36 = vpop.permute.xlu2 %1018  ;;  %v1229_v20 = vld [vmem:[#allocation2 + $0x30] sm:$0xff] }
0x1d65   :  { %1021 = vst.msk [vmem:[#allocation2 + $0x18] sm:$0xff] %vm189_vm0, %v1019_v36 }
0x1d6c   :  { %v1226_v44 = vld [vmem:[#allocation2 + $0x18] sm:$0xff] }
0x1d6d   :  { %v1232_v46 = vpack.c.bf16 %v1226_v44, %v1225_v49 }
0x1dc8   :  { %v1210_v37 = vpop.permute.xlu0 %1209 }
0x1dc9   :  { %v1212_v38 = vmul.f32 %v1210_v37, %v1194_v14 }
0x1dcb   :  { %1214 = vrot.lane.b32.xlu0 %v1212_v38, %s1665_s10 }
0x1dd0   :  { %v872_v39 = vpop.permute.xlu0 %871 }
0x1dd1   :  { %874 = vst.msk [vmem:[#allocation2] sm:$0xff] %vm189_vm0, %v872_v39 }
0x1dd8   :  { %v1223_v40 = vld [vmem:[#allocation2] sm:$0xff] }
0x1dd9   :  { %v1231_v41 = vpack.c.bf16 %v1224_v12, %v1223_v40 }
0x1ddb   :  { %1465 = vmatmul.msk.bf16.vlgmr.msra.gmra.mxu0 %vm189_vm0, %v1231_v41 }
0x1de2   :  { %v1281_v42 = vpop.f32.mrf.mxu2 }
0x1de3   :  { %v1282_v43 = vadd.f32 %v1508_v5, %v1281_v42 }
0x1de5   :  { %1310 = vst.msk [vmem:[%s2051_s5 + $0x8] sm:$0xff] %vm189_vm0, %v1282_v43 }
0x1dea   :  { %v1283_v3 = vpop.f32.mrf.mxu2 }
0x1deb   :  { %v1284_v51 = vadd.f32 %v1508_v5, %v1283_v3  ;;  %1466 = vmatmul.msk.bf16.gmra.mxu0 %vm189_vm0, %v1232_v46 }
0x1ded   :  { %1312 = vrot.lane.b32.xlu1 %v1284_v51, %s1663_s8 }
0x1e3d   :  { %v1215_v52 = vpop.permute.xlu0 %1214 }
0x1e3e   :  { %1217 = vst.msk [vmem:[#allocation2 + $0x38] sm:$0xff] %vm189_vm0, %v1215_v52 }
0x1e45   :  { %v1230_v54 = vld [vmem:[#allocation2 + $0x38] sm:$0xff] }
0x1e46   :  { %v1234_v48 = vpack.c.bf16 %v1230_v54, %v1229_v20 }
0x1e48   :  { %1468 = vmatmul.msk.bf16.gmra.mxu2 %vm189_vm0, %v1234_v48 }
0x1e58   :  { %v1271_v30 = vpop.f32.mrf.mxu0 }
0x1e59   :  { %v1272_v55 = vadd.f32 %v1508_v5, %v1271_v30 }
0x1e5b   :  { %1291 = vst.msk [vmem:[%s2051_s5] sm:$0xff] %vm189_vm0, %v1272_v55 }
0x1e5f   :  { %v1313_v56 = vpop.permute.xlu1 %1312 }
0x1e60   :  { %1315 = vst.msk [vmem:[%s2051_s5 + $0x8] sm:$0xff] %vm1296_vm1, %v1313_v56  ;;  %v1273_v57 = vpop.f32.mrf.mxu0 }
0x1e61   :  { %v1274_v58 = vadd.f32 %v1508_v5, %v1273_v57 }
0x1e63   :  { %1293 = vrot.lane.b32.xlu0 %v1274_v58, %s1663_s8 }
0x1e68   :  { %v1276_v59 = vpop.f32.mrf.mxu0 }
0x1e69   :  { %v1277_v60 = vadd.f32 %v1508_v5, %v1276_v59 }
0x1e6b   :  { %1299 = vrot.lane.b32.xlu2 %v1277_v60, %s1665_s10 }
0x1e70   :  { %v1278_v61 = vpop.f32.mrf.mxu0 }
0x1e71   :  { %v1279_v63 = vadd.f32 %v1508_v5, %v1278_v61 }
0x1e73   :  { %1305 = vrot.lane.b32.xlu1 %v1279_v63, %s1664_s9 }
0x1ec5   :  { %v1300_v4 = vpop.permute.xlu2 %1299 }
0x1ecb   :  { %v1286_v34 = vpop.f32.mrf.mxu2 }
0x1ecc   :  { %v1287_v0 = vadd.f32 %v1508_v5, %v1286_v34 }
0x1ece   :  { %1317 = vrot.lane.b32.xlu0 %v1287_v0, %s1665_s10 }
0x1ed3   :  { %v1288_v1 = vpop.f32.mrf.mxu2 }
0x1ed4   :  { %v1289_v21 = vadd.f32 %v1508_v5, %v1288_v1 }
0x1ed5   :  { %v1294_v27 = vpop.permute.xlu0 %1293 }
0x1ed6   :  { %1297 = vst.msk [vmem:[%s2051_s5] sm:$0xff] %vm1296_vm1, %v1294_v27  ;;  %1322 = vrot.lane.b32.xlu2 %v1289_v21, %s1664_s9 }
0x1ed7   :  { %1303 = vst.msk [vmem:[%s2051_s5] sm:$0xff] %vm1302_vm2, %v1300_v4 }
0x1ee5   :  { %v1306_v8 = vpop.permute.xlu1 %1305 }
0x1ee6   :  { %1309 = vst.msk [vmem:[%s2051_s5] sm:$0xff] %vm1308_vm3, %v1306_v8 }
0x1f30   :  { %v1323_v9 = vpop.permute.xlu2 %1322 }
0x1f40   :  { %v1318_v2 = vpop.permute.xlu0 %1317 }
0x1f41   :  { %1320 = vst.msk [vmem:[%s2051_s5 + $0x8] sm:$0xff] %vm1302_vm2, %v1318_v2 }
0x1f42   :  { %1325 = vst.msk [vmem:[%s2051_s5 + $0x8] sm:$0xff] %vm1308_vm3, %v1323_v9 }
0x1f43   :  { %1330 = vsyncpa [#allocation5], 1 }
0x1f44   :  { %1331 = vsyncpa [#allocation7], 1 }

</bundles_post_ra>
